<compile_context>
chip_gen: v7x
topology: tpu7x:2x2x1
jax: 0.10.0
libtpu: 0.0.40
codegen_flags: <defaults>
</compile_context>

<pallas_src>
import jax
import jax.numpy as jnp
from jax import lax
from jax.experimental import pallas as pl
from jax.experimental.pallas import tpu as pltpu


def _make_msa_conv_kernel(*, TC, TH, W, H, KH, KW, dil, pad_h, pad_w,
                          halo_rows, CC):
    KK = KH * KW

    def kernel(q_ref, k_ref, ktop_ref, kbot_ref, o_ref, acc_ref):
        # q_ref, k_ref : (1, TC, TH, W)         current row tile of Q / K
        # ktop_ref     : (1, TC, halo_rows, W)  rows just above the tile
        # kbot_ref     : (1, TC, halo_rows, W)  rows just below the tile
        # o_ref        : (1, KK, TH, W)
        # acc_ref      : (KK, TH, W) float32    resident across the C grid axis
        ht = pl.program_id(1)
        ci = pl.program_id(2)
        nc = pl.num_programs(2)

        @pl.when(ci == 0)
        def _init():
            acc_ref[...] = jnp.zeros_like(acc_ref)

        # Stream channels of this C block in small chunks: only (CC, TH, W)
        # sized temporaries stay live (no full (C,H,W) product per offset).
        for c0 in range(0, TC, CC):
            cc = min(CC, TC - c0)
            q_c = q_ref[0, pl.ds(c0, cc)]                        # (cc, TH, W)
            k_c = k_ref[0, pl.ds(c0, cc)]                        # (cc, TH, W)

            if pad_h > 0:
                # Row halo taken from the neighbouring 8-row-aligned blocks,
                # zeroed where the global row index is outside the image
                # (replaces the jnp.pad of K in HBM).
                top = ktop_ref[0, pl.ds(c0, cc), pl.ds(halo_rows - pad_h, pad_h)]
                bot = kbot_ref[0, pl.ds(c0, cc), pl.ds(0, pad_h)]
                r = lax.broadcasted_iota(jnp.int32, (cc, pad_h, W), 1)
                top = jnp.where(r + (ht * TH - pad_h) >= 0, top, 0)
                bot = jnp.where(r + (ht + 1) * TH < H, bot, 0)
                khalo = jnp.concatenate([top, k_c, bot], axis=1)  # (cc, TH+2*pad_h, W)
            else:
                khalo = k_c

            # kj (lane) shift hoisted out of the ki loop: one shifted slab per
            # (chunk, kj), reused by all KH row offsets.
            for kj in range(KW):
                dx = kj * dil - pad_w
                if dx == 0:
                    ksh = khalo
                else:
                    # lane rotation: ksh[..., x] = khalo[..., (x+dx) mod W];
                    # the wrapped lanes are zeroed once at the final store.
                    ksh = jnp.concatenate(
                        [khalo[:, :, dx:], khalo[:, :, :dx]], axis=2)
                for ki in range(KH):
                    rows = ksh[:, ki * dil:ki * dil + TH, :]      # (cc, TH, W)
                    # per-channel streaming multiply-accumulate, f32 running sum
                    part = (q_c[0] * rows[0]).astype(jnp.float32)
                    for c in range(1, cc):
                        part = part + (q_c[c] * rows[c]).astype(jnp.float32)
                    acc_ref[ki * KW + kj] += part

        # Last C step: zero the lanes whose kj-shift fell outside the image
        # (zero padding along W) and store in the output dtype.
        @pl.when(ci == nc - 1)
        def _finalize():
            col = lax.broadcasted_iota(jnp.int32, (TH, W), 1)
            for o in range(KK):
                dx = (o % KW) * dil - pad_w
                if dx == 0:
                    o_ref[0, o] = acc_ref[o].astype(o_ref.dtype)
                else:
                    valid = jnp.logical_and(col + dx >= 0, col + dx < W)
                    o_ref[0, o] = jnp.where(valid, acc_ref[o], 0.0).astype(o_ref.dtype)

    return kernel


def _largest_divisor_leq(n, cap):
    cap = max(1, min(n, cap))
    for d in range(cap, 0, -1):
        if n % d == 0:
            return d
    return 1


def msa_conv2d_v1(Q, K, kernel_size_h=3, kernel_size_w=3, dilation=1):
    """Pallas TPU implementation of MSA_Conv2d_v1(kernel_size, dilation).forward(Q, K)."""
    B, C, H, W = Q.shape
    assert K.shape == Q.shape, "Q and K must have identical shapes"
    assert kernel_size_h % 2 == 1 and kernel_size_w % 2 == 1, (
        "'same'-size output requires odd kernel sizes (matches the PyTorch op)")
    KH, KW, dil = kernel_size_h, kernel_size_w, dilation
    KK = KH * KW
    pad_h = dil * (KH - 1) // 2
    pad_w = dil * (KW - 1) // 2
    assert pad_h < H and pad_w < W, "dilated window larger than the feature map"

    dsz = jnp.dtype(K.dtype).itemsize

    # ---- tile selection (targets ~10-12 MiB of live VMEM per grid step so it
    # fits v7x's 64 MiB physical / 32 MiB scoped VMEM; v5e/v6e have headroom).
    tc_cap = min(64, max(1, (2 * 1024 * 1024) // (dsz * 32 * W)))
    TC = _largest_divisor_leq(C, tc_cap)     # channels per grid step
    nC = C // TC

    # Row-halo granularity: multiples of 8 rows keep the halo BlockSpecs
    # sublane-aligned; the halo must cover pad_h rows.
    HALO = 8 * max(1, -(-pad_h // 8))
    if H % HALO == 0 and H >= HALO:
        halo_rows = HALO
        valid_th = [t for t in range(HALO, H + 1, HALO) if H % t == 0]
    else:
        halo_rows = H                         # irregular H: one full-height tile
        valid_th = [H]
    assert pad_h <= halo_rows

    # Largest row tile whose main K block stays around ~2 MiB.
    budget_rows = max(halo_rows, (2 * 1024 * 1024) // max(1, dsz * TC * W))
    TH = max(t for t in valid_th if t <= budget_rows)
    # Prefer >= 2 row tiles so a second TensorCore (v7x megacore) gets parallel
    # work even when B == 1 (and so the halo path is exercised).
    if TH == H and len(valid_th) > 1:
        TH = max(t for t in valid_th if t < H)
    nH = H // TH
    RPT = TH // halo_rows                     # halo blocks per row tile
    NHB = H // halo_rows                      # halo blocks along H

    CC = min(TC, 8)                           # channel chunk streamed in-kernel

    kernel = _make_msa_conv_kernel(
        TC=TC, TH=TH, W=W, H=H, KH=KH, KW=KW, dil=dil,
        pad_h=pad_h, pad_w=pad_w, halo_rows=halo_rows, CC=CC)

    qk_spec = pl.BlockSpec((1, TC, TH, W), lambda b, h, c: (b, c, h, 0))
    top_spec = pl.BlockSpec(
        (1, TC, halo_rows, W),
        lambda b, h, c: (b, c, jnp.maximum(h * RPT - 1, 0), 0))
    bot_spec = pl.BlockSpec(
        (1, TC, halo_rows, W),
        lambda b, h, c: (b, c, jnp.minimum((h + 1) * RPT, NHB - 1), 0))
    # TODO(synk): for W < 128 the KK*TH output stores are lane-masked; folding
    # several batch elements (or W tiles) into the lane axis would make the
    # stores lane-dense at the cost of an extra relayout pass in HBM.
    out_spec = pl.BlockSpec((1, KK, TH, W), lambda b, h, c: (b, 0, h, 0))

    # Explicit VMEM sizing + advisory cost estimate for the XLA scheduler.
    blk_bytes = dsz * (2 * TC * TH * W + 2 * TC * halo_rows * W + KK * TH * W)
    est_vmem = 2 * blk_bytes + 4 * KK * TH * W + 4 * dsz * CC * (TH + 2 * pad_h) * W
    vmem_limit = int(min(64 * 2 ** 20, max(32 * 2 ** 20, 2 * est_vmem)))
    cost = pl.CostEstimate(
        flops=2 * B * KK * C * H * W,
        transcendentals=0,
        bytes_accessed=dsz * (2 * B * C * H * W + B * KK * H * W))

    return pl.pallas_call(
        kernel,
        out_shape=jax.ShapeDtypeStruct((B, KK, H, W), K.dtype),
        grid_spec=pltpu.PrefetchScalarGridSpec(
            num_scalar_prefetch=0,
            grid=(B, nH, nC),
            in_specs=[qk_spec, qk_spec, top_spec, bot_spec],
            out_specs=out_spec,
            scratch_shapes=[pltpu.VMEM((KK, TH, W), jnp.float32)],
        ),
        compiler_params=pltpu.CompilerParams(
            dimension_semantics=("parallel", "parallel", "arbitrary"),
            vmem_limit_bytes=vmem_limit,
        ),
        cost_estimate=cost,
    )(Q, K, K, K)


class MSAConv2dV1:
    """Mirrors the PyTorch MSA_Conv2d_v1 module interface (forward only)."""

    def __init__(self, kernel_size, dilation=1, im2col_step=32):
        if isinstance(kernel_size, int):
            self.kernel_size_h = self.kernel_size_w = kernel_size
        else:
            self.kernel_size_h, self.kernel_size_w = kernel_size
        self.dilation = dilation

    def __call__(self, Q, K):
        return msa_conv2d_v1(Q, K, self.kernel_size_h, self.kernel_size_w,
                             self.dilation)


def _reference_msa_conv(Q, K, kh, kw, dil):
    """Pure-JAX reference (mirrors nn.Unfold-based semantics)."""
    B, C, H, W = Q.shape
    pad_h = dil * (kh - 1) // 2
    pad_w = dil * (kw - 1) // 2
    Kpad = jnp.pad(K, ((0, 0), (0, 0), (pad_h, pad_h), (pad_w, pad_w)))
    outs = []
    for ki in range(kh):
        for kj in range(kw):
            Ks = Kpad[:, :, ki * dil:ki * dil + H, kj * dil:kj * dil + W]
            outs.append(jnp.sum(Q * Ks, axis=1))          # (B, H, W)
    return jnp.stack(outs, axis=1)                        # (B, kh*kw, H, W)


if __name__ == "__main__":
    B, C, H, W = 2, 4, 16, 16
    key = jax.random.PRNGKey(0)
    kq, kk = jax.random.split(key)
    Q = jax.random.normal(kq, (B, C, H, W), dtype=jnp.float32)
    K = jax.random.normal(kk, (B, C, H, W), dtype=jnp.float32)

    # Canonical module configuration: MSA_Conv2d_v1(kernel_size=3, dilation=1).
    mod = MSAConv2dV1(kernel_size=3, dilation=1)
    out = jax.block_until_ready(mod(Q, K))
    ref = _reference_msa_conv(Q, K, 3, 3, 1)
    assert out.shape == (B, 9, H, W)
    assert jnp.allclose(out, ref, atol=1e-5, rtol=1e-5), "mismatch (3x3, dil=1)"

    # Extra check: asymmetric window + dilation exercises halo / lane masking.
    out2 = jax.block_until_ready(msa_conv2d_v1(Q, K, 5, 3, 2))
    ref2 = _reference_msa_conv(Q, K, 5, 3, 2)
    assert out2.shape == (B, 15, H, W)
    assert jnp.allclose(out2, ref2, atol=1e-5, rtol=1e-5), "mismatch (5x3, dil=2)"

    print("KERNEL_OK")
</pallas_src>

<mosaic_0001>
module attributes {stable_mosaic.version = 11 : i64} {
  func.func @kernel(%arg0: i32, %arg1: i32, %arg2: i32, %arg3: memref<1x4x8x16xf32, #tpu.memory_space<vmem>>, %arg4: memref<1x4x8x16xf32, #tpu.memory_space<vmem>>, %arg5: memref<1x4x8x16xf32, #tpu.memory_space<vmem>>, %arg6: memref<1x4x8x16xf32, #tpu.memory_space<vmem>>, %arg7: memref<1x9x8x16xf32, #tpu.memory_space<vmem>>, %arg8: memref<9x8x16xf32, #tpu.memory_space<vmem>>) attributes {dimension_semantics = [#tpu.dimension_semantics<parallel>, #tpu.dimension_semantics<parallel>, #tpu.dimension_semantics<arbitrary>], iteration_bounds = array<i64: 2, 2, 1>, scalar_prefetch = 0 : i64, scratch_operands = 1 : i64, tpu.core_type = #tpu.core_type<tc>, window_params = [{transform_indices = @transform_0, window_bounds = array<i64: 1, 4, 8, 16>}, {transform_indices = @transform_1, window_bounds = array<i64: 1, 4, 8, 16>}, {transform_indices = @transform_2, window_bounds = array<i64: 1, 4, 8, 16>}, {transform_indices = @transform_3, window_bounds = array<i64: 1, 4, 8, 16>}, {transform_indices = @transform_4, window_bounds = array<i64: 1, 9, 8, 16>}]} {
    %c0_i32 = arith.constant 0 : i32
    %0 = arith.cmpi eq, %arg2, %c0_i32 : i32
    %1 = arith.extui %0 : i1 to i32
    %c0_i32_0 = arith.constant 0 : i32
    %2 = arith.cmpi ne, %1, %c0_i32_0 : i32
    scf.if %2 {
      %cst = arith.constant 0.000000e+00 : f32
      %310 = vector.broadcast %cst : f32 to vector<9x8x16xf32>
      %c0_69 = arith.constant 0 : index
      %c0_70 = arith.constant 0 : index
      %c0_71 = arith.constant 0 : index
      %311 = vector.load %arg8[%c0_69, %c0_70, %c0_71] : memref<9x8x16xf32, #tpu.memory_space<vmem>>, vector<9x8x16xf32>
      tpu.vector_store %arg8[%c0_69, %c0_70, %c0_71], %310 {strides = array<i32>} : memref<9x8x16xf32, #tpu.memory_space<vmem>>, vector<9x8x16xf32>,
    } else {
    }
    %c0 = arith.constant 0 : index
    %c0_1 = arith.constant 0 : index
    %c0_2 = arith.constant 0 : index
    %c0_3 = arith.constant 0 : index
    %3 = vector.load %arg3[%c0, %c0_1, %c0_2, %c0_3] : memref<1x4x8x16xf32, #tpu.memory_space<vmem>>, vector<1x4x8x16xf32>
    %4 = vector.shape_cast %3 : vector<1x4x8x16xf32> to vector<4x8x16xf32>
    %c0_4 = arith.constant 0 : index
    %c0_5 = arith.constant 0 : index
    %c0_6 = arith.constant 0 : index
    %c0_7 = arith.constant 0 : index
    %5 = vector.load %arg4[%c0_4, %c0_5, %c0_6, %c0_7] : memref<1x4x8x16xf32, #tpu.memory_space<vmem>>, vector<1x4x8x16xf32>
    %6 = vector.shape_cast %5 : vector<1x4x8x16xf32> to vector<4x8x16xf32>
    %c0_8 = arith.constant 0 : index
    %c0_9 = arith.constant 0 : index
    %c7 = arith.constant 7 : index
    %c0_10 = arith.constant 0 : index
    %7 = vector.load %arg5[%c0_8, %c0_9, %c7, %c0_10] : memref<1x4x8x16xf32, #tpu.memory_space<vmem>>, vector<1x4x1x16xf32>
    %8 = vector.shape_cast %7 : vector<1x4x1x16xf32> to vector<4x1x16xf32>
    %c0_11 = arith.constant 0 : index
    %c0_12 = arith.constant 0 : index
    %c0_13 = arith.constant 0 : index
    %c0_14 = arith.constant 0 : index
    %9 = vector.load %arg6[%c0_11, %c0_12, %c0_13, %c0_14] : memref<1x4x8x16xf32, #tpu.memory_space<vmem>>, vector<1x4x1x16xf32>
    %10 = vector.shape_cast %9 : vector<1x4x1x16xf32> to vector<4x1x16xf32>
    %11 = tpu.iota {dimensions = array<i32: 1>} : vector<4x1x16xi32>
    %c8_i32 = arith.constant 8 : i32
    %12 = arith.muli %arg1, %c8_i32 : i32
    %c1_i32 = arith.constant 1 : i32
    %13 = arith.subi %12, %c1_i32 : i32
    %14 = vector.broadcast %13 : i32 to vector<4x1x16xi32>
    %15 = arith.addi %11, %14 : vector<4x1x16xi32>
    %c0_i32_15 = arith.constant 0 : i32
    %16 = vector.broadcast %c0_i32_15 : i32 to vector<4x1x16xi32>
    %17 = arith.cmpi sge, %15, %16 : vector<4x1x16xi32>
    %c0_i32_16 = arith.constant 0 : i32
    %18 = arith.sitofp %c0_i32_16 : i32 to f32
    %19 = vector.broadcast %18 : f32 to vector<4x1x16xf32>
    %20 = arith.select %17, %8, %19 : vector<4x1x16xi1>, vector<4x1x16xf32>
    %c1_i32_17 = arith.constant 1 : i32
    %21 = arith.addi %arg1, %c1_i32_17 : i32
    %c8_i32_18 = arith.constant 8 : i32
    %22 = arith.muli %21, %c8_i32_18 : i32
    %23 = vector.broadcast %22 : i32 to vector<4x1x16xi32>
    %24 = arith.addi %11, %23 : vector<4x1x16xi32>
    %c16_i32 = arith.constant 16 : i32
    %25 = vector.broadcast %c16_i32 : i32 to vector<4x1x16xi32>
    %26 = arith.cmpi slt, %24, %25 : vector<4x1x16xi32>
    %c0_i32_19 = arith.constant 0 : i32
    %27 = arith.sitofp %c0_i32_19 : i32 to f32
    %28 = vector.broadcast %27 : f32 to vector<4x1x16xf32>
    %29 = arith.select %26, %10, %28 : vector<4x1x16xi1>, vector<4x1x16xf32>
    %30 = tpu.concatenate %20, %6, %29 in 1 : vector<4x1x16xf32>, vector<4x8x16xf32>, vector<4x1x16xf32> -> vector<4x10x16xf32>
    %31 = vector.extract_strided_slice %30 {offsets = [0, 0, 15], sizes = [4, 10, 1], strides = [1, 1, 1]} : vector<4x10x16xf32> to vector<4x10x1xf32>
    %32 = vector.extract_strided_slice %30 {offsets = [0, 0, 0], sizes = [4, 10, 15], strides = [1, 1, 1]} : vector<4x10x16xf32> to vector<4x10x15xf32>
    %33 = tpu.concatenate %31, %32 in 2 : vector<4x10x1xf32>, vector<4x10x15xf32> -> vector<4x10x16xf32>
    %34 = vector.extract_strided_slice %33 {offsets = [0, 0, 0], sizes = [4, 8, 16], strides = [1, 1, 1]} : vector<4x10x16xf32> to vector<4x8x16xf32>
    %35 = vector.extract_strided_slice %4 {offsets = [0, 0, 0], sizes = [1, 8, 16], strides = [1, 1, 1]} : vector<4x8x16xf32> to vector<1x8x16xf32>
    %36 = vector.shape_cast %35 : vector<1x8x16xf32> to vector<8x16xf32>
    %37 = vector.extract_strided_slice %34 {offsets = [0, 0, 0], sizes = [1, 8, 16], strides = [1, 1, 1]} : vector<4x8x16xf32> to vector<1x8x16xf32>
    %38 = vector.shape_cast %37 : vector<1x8x16xf32> to vector<8x16xf32>
    %39 = arith.mulf %36, %38 : vector<8x16xf32>
    %40 = vector.extract_strided_slice %4 {offsets = [1, 0, 0], sizes = [1, 8, 16], strides = [1, 1, 1]} : vector<4x8x16xf32> to vector<1x8x16xf32>
    %41 = vector.shape_cast %40 : vector<1x8x16xf32> to vector<8x16xf32>
    %42 = vector.extract_strided_slice %34 {offsets = [1, 0, 0], sizes = [1, 8, 16], strides = [1, 1, 1]} : vector<4x8x16xf32> to vector<1x8x16xf32>
    %43 = vector.shape_cast %42 : vector<1x8x16xf32> to vector<8x16xf32>
    %44 = arith.mulf %41, %43 : vector<8x16xf32>
    %45 = arith.addf %39, %44 : vector<8x16xf32>
    %46 = vector.extract_strided_slice %4 {offsets = [2, 0, 0], sizes = [1, 8, 16], strides = [1, 1, 1]} : vector<4x8x16xf32> to vector<1x8x16xf32>
    %47 = vector.shape_cast %46 : vector<1x8x16xf32> to vector<8x16xf32>
    %48 = vector.extract_strided_slice %34 {offsets = [2, 0, 0], sizes = [1, 8, 16], strides = [1, 1, 1]} : vector<4x8x16xf32> to vector<1x8x16xf32>
    %49 = vector.shape_cast %48 : vector<1x8x16xf32> to vector<8x16xf32>
    %50 = arith.mulf %47, %49 : vector<8x16xf32>
    %51 = arith.addf %45, %50 : vector<8x16xf32>
    %52 = vector.extract_strided_slice %4 {offsets = [3, 0, 0], sizes = [1, 8, 16], strides = [1, 1, 1]} : vector<4x8x16xf32> to vector<1x8x16xf32>
    %53 = vector.shape_cast %52 : vector<1x8x16xf32> to vector<8x16xf32>
    %54 = vector.extract_strided_slice %34 {offsets = [3, 0, 0], sizes = [1, 8, 16], strides = [1, 1, 1]} : vector<4x8x16xf32> to vector<1x8x16xf32>
    %55 = vector.shape_cast %54 : vector<1x8x16xf32> to vector<8x16xf32>
    %56 = arith.mulf %53, %55 : vector<8x16xf32>
    %57 = arith.addf %51, %56 : vector<8x16xf32>
    %c0_20 = arith.constant 0 : index
    %c0_21 = arith.constant 0 : index
    %c0_22 = arith.constant 0 : index
    %58 = vector.load %arg8[%c0_20, %c0_21, %c0_22] : memref<9x8x16xf32, #tpu.memory_space<vmem>>, vector<1x8x16xf32>
    %59 = vector.shape_cast %58 : vector<1x8x16xf32> to vector<8x16xf32>
    %60 = arith.addf %59, %57 : vector<8x16xf32>
    %c0_23 = arith.constant 0 : index
    %c0_24 = arith.constant 0 : index
    %c0_25 = arith.constant 0 : index
    %61 = vector.load %arg8[%c0_23, %c0_24, %c0_25] : memref<9x8x16xf32, #tpu.memory_space<vmem>>, vector<1x8x16xf32>
    %62 = vector.shape_cast %61 : vector<1x8x16xf32> to vector<8x16xf32>
    %63 = vector.shape_cast %60 : vector<8x16xf32> to vector<1x8x16xf32>
    tpu.vector_store %arg8[%c0_23, %c0_24, %c0_25], %63 {strides = array<i32>} : memref<9x8x16xf32, #tpu.memory_space<vmem>>, vector<1x8x16xf32>,
    %64 = vector.extract_strided_slice %33 {offsets = [0, 1, 0], sizes = [4, 8, 16], strides = [1, 1, 1]} : vector<4x10x16xf32> to vector<4x8x16xf32>
    %65 = vector.extract_strided_slice %4 {offsets = [0, 0, 0], sizes = [1, 8, 16], strides = [1, 1, 1]} : vector<4x8x16xf32> to vector<1x8x16xf32>
    %66 = vector.shape_cast %65 : vector<1x8x16xf32> to vector<8x16xf32>
    %67 = vector.extract_strided_slice %64 {offsets = [0, 0, 0], sizes = [1, 8, 16], strides = [1, 1, 1]} : vector<4x8x16xf32> to vector<1x8x16xf32>
    %68 = vector.shape_cast %67 : vector<1x8x16xf32> to vector<8x16xf32>
    %69 = arith.mulf %66, %68 : vector<8x16xf32>
    %70 = vector.extract_strided_slice %4 {offsets = [1, 0, 0], sizes = [1, 8, 16], strides = [1, 1, 1]} : vector<4x8x16xf32> to vector<1x8x16xf32>
    %71 = vector.shape_cast %70 : vector<1x8x16xf32> to vector<8x16xf32>
    %72 = vector.extract_strided_slice %64 {offsets = [1, 0, 0], sizes = [1, 8, 16], strides = [1, 1, 1]} : vector<4x8x16xf32> to vector<1x8x16xf32>
    %73 = vector.shape_cast %72 : vector<1x8x16xf32> to vector<8x16xf32>
    %74 = arith.mulf %71, %73 : vector<8x16xf32>
    %75 = arith.addf %69, %74 : vector<8x16xf32>
    %76 = vector.extract_strided_slice %4 {offsets = [2, 0, 0], sizes = [1, 8, 16], strides = [1, 1, 1]} : vector<4x8x16xf32> to vector<1x8x16xf32>
    %77 = vector.shape_cast %76 : vector<1x8x16xf32> to vector<8x16xf32>
    %78 = vector.extract_strided_slice %64 {offsets = [2, 0, 0], sizes = [1, 8, 16], strides = [1, 1, 1]} : vector<4x8x16xf32> to vector<1x8x16xf32>
    %79 = vector.shape_cast %78 : vector<1x8x16xf32> to vector<8x16xf32>
    %80 = arith.mulf %77, %79 : vector<8x16xf32>
    %81 = arith.addf %75, %80 : vector<8x16xf32>
    %82 = vector.extract_strided_slice %4 {offsets = [3, 0, 0], sizes = [1, 8, 16], strides = [1, 1, 1]} : vector<4x8x16xf32> to vector<1x8x16xf32>
    %83 = vector.shape_cast %82 : vector<1x8x16xf32> to vector<8x16xf32>
    %84 = vector.extract_strided_slice %64 {offsets = [3, 0, 0], sizes = [1, 8, 16], strides = [1, 1, 1]} : vector<4x8x16xf32> to vector<1x8x16xf32>
    %85 = vector.shape_cast %84 : vector<1x8x16xf32> to vector<8x16xf32>
    %86 = arith.mulf %83, %85 : vector<8x16xf32>
    %87 = arith.addf %81, %86 : vector<8x16xf32>
    %c3 = arith.constant 3 : index
    %c0_26 = arith.constant 0 : index
    %c0_27 = arith.constant 0 : index
    %88 = vector.load %arg8[%c3, %c0_26, %c0_27] : memref<9x8x16xf32, #tpu.memory_space<vmem>>, vector<1x8x16xf32>
    %89 = vector.shape_cast %88 : vector<1x8x16xf32> to vector<8x16xf32>
    %90 = arith.addf %89, %87 : vector<8x16xf32>
    %c3_28 = arith.constant 3 : index
    %c0_29 = arith.constant 0 : index
    %c0_30 = arith.constant 0 : index
    %91 = vector.load %arg8[%c3_28, %c0_29, %c0_30] : memref<9x8x16xf32, #tpu.memory_space<vmem>>, vector<1x8x16xf32>
    %92 = vector.shape_cast %91 : vector<1x8x16xf32> to vector<8x16xf32>
    %93 = vector.shape_cast %90 : vector<8x16xf32> to vector<1x8x16xf32>
    tpu.vector_store %arg8[%c3_28, %c0_29, %c0_30], %93 {strides = array<i32>} : memref<9x8x16xf32, #tpu.memory_space<vmem>>, vector<1x8x16xf32>,
    %94 = vector.extract_strided_slice %33 {offsets = [0, 2, 0], sizes = [4, 8, 16], strides = [1, 1, 1]} : vector<4x10x16xf32> to vector<4x8x16xf32>
    %95 = vector.extract_strided_slice %4 {offsets = [0, 0, 0], sizes = [1, 8, 16], strides = [1, 1, 1]} : vector<4x8x16xf32> to vector<1x8x16xf32>
    %96 = vector.shape_cast %95 : vector<1x8x16xf32> to vector<8x16xf32>
    %97 = vector.extract_strided_slice %94 {offsets = [0, 0, 0], sizes = [1, 8, 16], strides = [1, 1, 1]} : vector<4x8x16xf32> to vector<1x8x16xf32>
    %98 = vector.shape_cast %97 : vector<1x8x16xf32> to vector<8x16xf32>
    %99 = arith.mulf %96, %98 : vector<8x16xf32>
    %100 = vector.extract_strided_slice %4 {offsets = [1, 0, 0], sizes = [1, 8, 16], strides = [1, 1, 1]} : vector<4x8x16xf32> to vector<1x8x16xf32>
    %101 = vector.shape_cast %100 : vector<1x8x16xf32> to vector<8x16xf32>
    %102 = vector.extract_strided_slice %94 {offsets = [1, 0, 0], sizes = [1, 8, 16], strides = [1, 1, 1]} : vector<4x8x16xf32> to vector<1x8x16xf32>
    %103 = vector.shape_cast %102 : vector<1x8x16xf32> to vector<8x16xf32>
    %104 = arith.mulf %101, %103 : vector<8x16xf32>
    %105 = arith.addf %99, %104 : vector<8x16xf32>
    %106 = vector.extract_strided_slice %4 {offsets = [2, 0, 0], sizes = [1, 8, 16], strides = [1, 1, 1]} : vector<4x8x16xf32> to vector<1x8x16xf32>
    %107 = vector.shape_cast %106 : vector<1x8x16xf32> to vector<8x16xf32>
    %108 = vector.extract_strided_slice %94 {offsets = [2, 0, 0], sizes = [1, 8, 16], strides = [1, 1, 1]} : vector<4x8x16xf32> to vector<1x8x16xf32>
    %109 = vector.shape_cast %108 : vector<1x8x16xf32> to vector<8x16xf32>
    %110 = arith.mulf %107, %109 : vector<8x16xf32>
    %111 = arith.addf %105, %110 : vector<8x16xf32>
    %112 = vector.extract_strided_slice %4 {offsets = [3, 0, 0], sizes = [1, 8, 16], strides = [1, 1, 1]} : vector<4x8x16xf32> to vector<1x8x16xf32>
    %113 = vector.shape_cast %112 : vector<1x8x16xf32> to vector<8x16xf32>
    %114 = vector.extract_strided_slice %94 {offsets = [3, 0, 0], sizes = [1, 8, 16], strides = [1, 1, 1]} : vector<4x8x16xf32> to vector<1x8x16xf32>
    %115 = vector.shape_cast %114 : vector<1x8x16xf32> to vector<8x16xf32>
    %116 = arith.mulf %113, %115 : vector<8x16xf32>
    %117 = arith.addf %111, %116 : vector<8x16xf32>
    %c6 = arith.constant 6 : index
    %c0_31 = arith.constant 0 : index
    %c0_32 = arith.constant 0 : index
    %118 = vector.load %arg8[%c6, %c0_31, %c0_32] : memref<9x8x16xf32, #tpu.memory_space<vmem>>, vector<1x8x16xf32>
    %119 = vector.shape_cast %118 : vector<1x8x16xf32> to vector<8x16xf32>
    %120 = arith.addf %119, %117 : vector<8x16xf32>
    %c6_33 = arith.constant 6 : index
    %c0_34 = arith.constant 0 : index
    %c0_35 = arith.constant 0 : index
    %121 = vector.load %arg8[%c6_33, %c0_34, %c0_35] : memref<9x8x16xf32, #tpu.memory_space<vmem>>, vector<1x8x16xf32>
    %122 = vector.shape_cast %121 : vector<1x8x16xf32> to vector<8x16xf32>
    %123 = vector.shape_cast %120 : vector<8x16xf32> to vector<1x8x16xf32>
    tpu.vector_store %arg8[%c6_33, %c0_34, %c0_35], %123 {strides = array<i32>} : memref<9x8x16xf32, #tpu.memory_space<vmem>>, vector<1x8x16xf32>,
    %124 = vector.extract_strided_slice %30 {offsets = [0, 0, 0], sizes = [4, 8, 16], strides = [1, 1, 1]} : vector<4x10x16xf32> to vector<4x8x16xf32>
    %125 = vector.extract_strided_slice %4 {offsets = [0, 0, 0], sizes = [1, 8, 16], strides = [1, 1, 1]} : vector<4x8x16xf32> to vector<1x8x16xf32>
    %126 = vector.shape_cast %125 : vector<1x8x16xf32> to vector<8x16xf32>
    %127 = vector.extract_strided_slice %124 {offsets = [0, 0, 0], sizes = [1, 8, 16], strides = [1, 1, 1]} : vector<4x8x16xf32> to vector<1x8x16xf32>
    %128 = vector.shape_cast %127 : vector<1x8x16xf32> to vector<8x16xf32>
    %129 = arith.mulf %126, %128 : vector<8x16xf32>
    %130 = vector.extract_strided_slice %4 {offsets = [1, 0, 0], sizes = [1, 8, 16], strides = [1, 1, 1]} : vector<4x8x16xf32> to vector<1x8x16xf32>
    %131 = vector.shape_cast %130 : vector<1x8x16xf32> to vector<8x16xf32>
    %132 = vector.extract_strided_slice %124 {offsets = [1, 0, 0], sizes = [1, 8, 16], strides = [1, 1, 1]} : vector<4x8x16xf32> to vector<1x8x16xf32>
    %133 = vector.shape_cast %132 : vector<1x8x16xf32> to vector<8x16xf32>
    %134 = arith.mulf %131, %133 : vector<8x16xf32>
    %135 = arith.addf %129, %134 : vector<8x16xf32>
    %136 = vector.extract_strided_slice %4 {offsets = [2, 0, 0], sizes = [1, 8, 16], strides = [1, 1, 1]} : vector<4x8x16xf32> to vector<1x8x16xf32>
    %137 = vector.shape_cast %136 : vector<1x8x16xf32> to vector<8x16xf32>
    %138 = vector.extract_strided_slice %124 {offsets = [2, 0, 0], sizes = [1, 8, 16], strides = [1, 1, 1]} : vector<4x8x16xf32> to vector<1x8x16xf32>
    %139 = vector.shape_cast %138 : vector<1x8x16xf32> to vector<8x16xf32>
    %140 = arith.mulf %137, %139 : vector<8x16xf32>
    %141 = arith.addf %135, %140 : vector<8x16xf32>
    %142 = vector.extract_strided_slice %4 {offsets = [3, 0, 0], sizes = [1, 8, 16], strides = [1, 1, 1]} : vector<4x8x16xf32> to vector<1x8x16xf32>
    %143 = vector.shape_cast %142 : vector<1x8x16xf32> to vector<8x16xf32>
    %144 = vector.extract_strided_slice %124 {offsets = [3, 0, 0], sizes = [1, 8, 16], strides = [1, 1, 1]} : vector<4x8x16xf32> to vector<1x8x16xf32>
    %145 = vector.shape_cast %144 : vector<1x8x16xf32> to vector<8x16xf32>
    %146 = arith.mulf %143, %145 : vector<8x16xf32>
    %147 = arith.addf %141, %146 : vector<8x16xf32>
    %c1 = arith.constant 1 : index
    %c0_36 = arith.constant 0 : index
    %c0_37 = arith.constant 0 : index
    %148 = vector.load %arg8[%c1, %c0_36, %c0_37] : memref<9x8x16xf32, #tpu.memory_space<vmem>>, vector<1x8x16xf32>
    %149 = vector.shape_cast %148 : vector<1x8x16xf32> to vector<8x16xf32>
    %150 = arith.addf %149, %147 : vector<8x16xf32>
    %c1_38 = arith.constant 1 : index
    %c0_39 = arith.constant 0 : index
    %c0_40 = arith.constant 0 : index
    %151 = vector.load %arg8[%c1_38, %c0_39, %c0_40] : memref<9x8x16xf32, #tpu.memory_space<vmem>>, vector<1x8x16xf32>
    %152 = vector.shape_cast %151 : vector<1x8x16xf32> to vector<8x16xf32>
    %153 = vector.shape_cast %150 : vector<8x16xf32> to vector<1x8x16xf32>
    tpu.vector_store %arg8[%c1_38, %c0_39, %c0_40], %153 {strides = array<i32>} : memref<9x8x16xf32, #tpu.memory_space<vmem>>, vector<1x8x16xf32>,
    %154 = vector.extract_strided_slice %30 {offsets = [0, 1, 0], sizes = [4, 8, 16], strides = [1, 1, 1]} : vector<4x10x16xf32> to vector<4x8x16xf32>
    %155 = vector.extract_strided_slice %4 {offsets = [0, 0, 0], sizes = [1, 8, 16], strides = [1, 1, 1]} : vector<4x8x16xf32> to vector<1x8x16xf32>
    %156 = vector.shape_cast %155 : vector<1x8x16xf32> to vector<8x16xf32>
    %157 = vector.extract_strided_slice %154 {offsets = [0, 0, 0], sizes = [1, 8, 16], strides = [1, 1, 1]} : vector<4x8x16xf32> to vector<1x8x16xf32>
    %158 = vector.shape_cast %157 : vector<1x8x16xf32> to vector<8x16xf32>
    %159 = arith.mulf %156, %158 : vector<8x16xf32>
    %160 = vector.extract_strided_slice %4 {offsets = [1, 0, 0], sizes = [1, 8, 16], strides = [1, 1, 1]} : vector<4x8x16xf32> to vector<1x8x16xf32>
    %161 = vector.shape_cast %160 : vector<1x8x16xf32> to vector<8x16xf32>
    %162 = vector.extract_strided_slice %154 {offsets = [1, 0, 0], sizes = [1, 8, 16], strides = [1, 1, 1]} : vector<4x8x16xf32> to vector<1x8x16xf32>
    %163 = vector.shape_cast %162 : vector<1x8x16xf32> to vector<8x16xf32>
    %164 = arith.mulf %161, %163 : vector<8x16xf32>
    %165 = arith.addf %159, %164 : vector<8x16xf32>
    %166 = vector.extract_strided_slice %4 {offsets = [2, 0, 0], sizes = [1, 8, 16], strides = [1, 1, 1]} : vector<4x8x16xf32> to vector<1x8x16xf32>
    %167 = vector.shape_cast %166 : vector<1x8x16xf32> to vector<8x16xf32>
    %168 = vector.extract_strided_slice %154 {offsets = [2, 0, 0], sizes = [1, 8, 16], strides = [1, 1, 1]} : vector<4x8x16xf32> to vector<1x8x16xf32>
    %169 = vector.shape_cast %168 : vector<1x8x16xf32> to vector<8x16xf32>
    %170 = arith.mulf %167, %169 : vector<8x16xf32>
    %171 = arith.addf %165, %170 : vector<8x16xf32>
    %172 = vector.extract_strided_slice %4 {offsets = [3, 0, 0], sizes = [1, 8, 16], strides = [1, 1, 1]} : vector<4x8x16xf32> to vector<1x8x16xf32>
    %173 = vector.shape_cast %172 : vector<1x8x16xf32> to vector<8x16xf32>
    %174 = vector.extract_strided_slice %154 {offsets = [3, 0, 0], sizes = [1, 8, 16], strides = [1, 1, 1]} : vector<4x8x16xf32> to vector<1x8x16xf32>
    %175 = vector.shape_cast %174 : vector<1x8x16xf32> to vector<8x16xf32>
    %176 = arith.mulf %173, %175 : vector<8x16xf32>
    %177 = arith.addf %171, %176 : vector<8x16xf32>
    %c4 = arith.constant 4 : index
    %c0_41 = arith.constant 0 : index
    %c0_42 = arith.constant 0 : index
    %178 = vector.load %arg8[%c4, %c0_41, %c0_42] : memref<9x8x16xf32, #tpu.memory_space<vmem>>, vector<1x8x16xf32>
    %179 = vector.shape_cast %178 : vector<1x8x16xf32> to vector<8x16xf32>
    %180 = arith.addf %179, %177 : vector<8x16xf32>
    %c4_43 = arith.constant 4 : index
    %c0_44 = arith.constant 0 : index
    %c0_45 = arith.constant 0 : index
    %181 = vector.load %arg8[%c4_43, %c0_44, %c0_45] : memref<9x8x16xf32, #tpu.memory_space<vmem>>, vector<1x8x16xf32>
    %182 = vector.shape_cast %181 : vector<1x8x16xf32> to vector<8x16xf32>
    %183 = vector.shape_cast %180 : vector<8x16xf32> to vector<1x8x16xf32>
    tpu.vector_store %arg8[%c4_43, %c0_44, %c0_45], %183 {strides = array<i32>} : memref<9x8x16xf32, #tpu.memory_space<vmem>>, vector<1x8x16xf32>,
    %184 = vector.extract_strided_slice %30 {offsets = [0, 2, 0], sizes = [4, 8, 16], strides = [1, 1, 1]} : vector<4x10x16xf32> to vector<4x8x16xf32>
    %185 = vector.extract_strided_slice %4 {offsets = [0, 0, 0], sizes = [1, 8, 16], strides = [1, 1, 1]} : vector<4x8x16xf32> to vector<1x8x16xf32>
    %186 = vector.shape_cast %185 : vector<1x8x16xf32> to vector<8x16xf32>
    %187 = vector.extract_strided_slice %184 {offsets = [0, 0, 0], sizes = [1, 8, 16], strides = [1, 1, 1]} : vector<4x8x16xf32> to vector<1x8x16xf32>
    %188 = vector.shape_cast %187 : vector<1x8x16xf32> to vector<8x16xf32>
    %189 = arith.mulf %186, %188 : vector<8x16xf32>
    %190 = vector.extract_strided_slice %4 {offsets = [1, 0, 0], sizes = [1, 8, 16], strides = [1, 1, 1]} : vector<4x8x16xf32> to vector<1x8x16xf32>
    %191 = vector.shape_cast %190 : vector<1x8x16xf32> to vector<8x16xf32>
    %192 = vector.extract_strided_slice %184 {offsets = [1, 0, 0], sizes = [1, 8, 16], strides = [1, 1, 1]} : vector<4x8x16xf32> to vector<1x8x16xf32>
    %193 = vector.shape_cast %192 : vector<1x8x16xf32> to vector<8x16xf32>
    %194 = arith.mulf %191, %193 : vector<8x16xf32>
    %195 = arith.addf %189, %194 : vector<8x16xf32>
    %196 = vector.extract_strided_slice %4 {offsets = [2, 0, 0], sizes = [1, 8, 16], strides = [1, 1, 1]} : vector<4x8x16xf32> to vector<1x8x16xf32>
    %197 = vector.shape_cast %196 : vector<1x8x16xf32> to vector<8x16xf32>
    %198 = vector.extract_strided_slice %184 {offsets = [2, 0, 0], sizes = [1, 8, 16], strides = [1, 1, 1]} : vector<4x8x16xf32> to vector<1x8x16xf32>
    %199 = vector.shape_cast %198 : vector<1x8x16xf32> to vector<8x16xf32>
    %200 = arith.mulf %197, %199 : vector<8x16xf32>
    %201 = arith.addf %195, %200 : vector<8x16xf32>
    %202 = vector.extract_strided_slice %4 {offsets = [3, 0, 0], sizes = [1, 8, 16], strides = [1, 1, 1]} : vector<4x8x16xf32> to vector<1x8x16xf32>
    %203 = vector.shape_cast %202 : vector<1x8x16xf32> to vector<8x16xf32>
    %204 = vector.extract_strided_slice %184 {offsets = [3, 0, 0], sizes = [1, 8, 16], strides = [1, 1, 1]} : vector<4x8x16xf32> to vector<1x8x16xf32>
    %205 = vector.shape_cast %204 : vector<1x8x16xf32> to vector<8x16xf32>
    %206 = arith.mulf %203, %205 : vector<8x16xf32>
    %207 = arith.addf %201, %206 : vector<8x16xf32>
    %c7_46 = arith.constant 7 : index
    %c0_47 = arith.constant 0 : index
    %c0_48 = arith.constant 0 : index
    %208 = vector.load %arg8[%c7_46, %c0_47, %c0_48] : memref<9x8x16xf32, #tpu.memory_space<vmem>>, vector<1x8x16xf32>
    %209 = vector.shape_cast %208 : vector<1x8x16xf32> to vector<8x16xf32>
    %210 = arith.addf %209, %207 : vector<8x16xf32>
    %c7_49 = arith.constant 7 : index
    %c0_50 = arith.constant 0 : index
    %c0_51 = arith.constant 0 : index
    %211 = vector.load %arg8[%c7_49, %c0_50, %c0_51] : memref<9x8x16xf32, #tpu.memory_space<vmem>>, vector<1x8x16xf32>
    %212 = vector.shape_cast %211 : vector<1x8x16xf32> to vector<8x16xf32>
    %213 = vector.shape_cast %210 : vector<8x16xf32> to vector<1x8x16xf32>
    tpu.vector_store %arg8[%c7_49, %c0_50, %c0_51], %213 {strides = array<i32>} : memref<9x8x16xf32, #tpu.memory_space<vmem>>, vector<1x8x16xf32>,
    %214 = vector.extract_strided_slice %30 {offsets = [0, 0, 1], sizes = [4, 10, 15], strides = [1, 1, 1]} : vector<4x10x16xf32> to vector<4x10x15xf32>
    %215 = vector.extract_strided_slice %30 {offsets = [0, 0, 0], sizes = [4, 10, 1], strides = [1, 1, 1]} : vector<4x10x16xf32> to vector<4x10x1xf32>
    %216 = tpu.concatenate %214, %215 in 2 : vector<4x10x15xf32>, vector<4x10x1xf32> -> vector<4x10x16xf32>
    %217 = vector.extract_strided_slice %216 {offsets = [0, 0, 0], sizes = [4, 8, 16], strides = [1, 1, 1]} : vector<4x10x16xf32> to vector<4x8x16xf32>
    %218 = vector.extract_strided_slice %4 {offsets = [0, 0, 0], sizes = [1, 8, 16], strides = [1, 1, 1]} : vector<4x8x16xf32> to vector<1x8x16xf32>
    %219 = vector.shape_cast %218 : vector<1x8x16xf32> to vector<8x16xf32>
    %220 = vector.extract_strided_slice %217 {offsets = [0, 0, 0], sizes = [1, 8, 16], strides = [1, 1, 1]} : vector<4x8x16xf32> to vector<1x8x16xf32>
    %221 = vector.shape_cast %220 : vector<1x8x16xf32> to vector<8x16xf32>
    %222 = arith.mulf %219, %221 : vector<8x16xf32>
    %223 = vector.extract_strided_slice %4 {offsets = [1, 0, 0], sizes = [1, 8, 16], strides = [1, 1, 1]} : vector<4x8x16xf32> to vector<1x8x16xf32>
    %224 = vector.shape_cast %223 : vector<1x8x16xf32> to vector<8x16xf32>
    %225 = vector.extract_strided_slice %217 {offsets = [1, 0, 0], sizes = [1, 8, 16], strides = [1, 1, 1]} : vector<4x8x16xf32> to vector<1x8x16xf32>
    %226 = vector.shape_cast %225 : vector<1x8x16xf32> to vector<8x16xf32>
    %227 = arith.mulf %224, %226 : vector<8x16xf32>
    %228 = arith.addf %222, %227 : vector<8x16xf32>
    %229 = vector.extract_strided_slice %4 {offsets = [2, 0, 0], sizes = [1, 8, 16], strides = [1, 1, 1]} : vector<4x8x16xf32> to vector<1x8x16xf32>
    %230 = vector.shape_cast %229 : vector<1x8x16xf32> to vector<8x16xf32>
    %231 = vector.extract_strided_slice %217 {offsets = [2, 0, 0], sizes = [1, 8, 16], strides = [1, 1, 1]} : vector<4x8x16xf32> to vector<1x8x16xf32>
    %232 = vector.shape_cast %231 : vector<1x8x16xf32> to vector<8x16xf32>
    %233 = arith.mulf %230, %232 : vector<8x16xf32>
    %234 = arith.addf %228, %233 : vector<8x16xf32>
    %235 = vector.extract_strided_slice %4 {offsets = [3, 0, 0], sizes = [1, 8, 16], strides = [1, 1, 1]} : vector<4x8x16xf32> to vector<1x8x16xf32>
    %236 = vector.shape_cast %235 : vector<1x8x16xf32> to vector<8x16xf32>
    %237 = vector.extract_strided_slice %217 {offsets = [3, 0, 0], sizes = [1, 8, 16], strides = [1, 1, 1]} : vector<4x8x16xf32> to vector<1x8x16xf32>
    %238 = vector.shape_cast %237 : vector<1x8x16xf32> to vector<8x16xf32>
    %239 = arith.mulf %236, %238 : vector<8x16xf32>
    %240 = arith.addf %234, %239 : vector<8x16xf32>
    %c2 = arith.constant 2 : index
    %c0_52 = arith.constant 0 : index
    %c0_53 = arith.constant 0 : index
    %241 = vector.load %arg8[%c2, %c0_52, %c0_53] : memref<9x8x16xf32, #tpu.memory_space<vmem>>, vector<1x8x16xf32>
    %242 = vector.shape_cast %241 : vector<1x8x16xf32> to vector<8x16xf32>
    %243 = arith.addf %242, %240 : vector<8x16xf32>
    %c2_54 = arith.constant 2 : index
    %c0_55 = arith.constant 0 : index
    %c0_56 = arith.constant 0 : index
    %244 = vector.load %arg8[%c2_54, %c0_55, %c0_56] : memref<9x8x16xf32, #tpu.memory_space<vmem>>, vector<1x8x16xf32>
    %245 = vector.shape_cast %244 : vector<1x8x16xf32> to vector<8x16xf32>
    %246 = vector.shape_cast %243 : vector<8x16xf32> to vector<1x8x16xf32>
    tpu.vector_store %arg8[%c2_54, %c0_55, %c0_56], %246 {strides = array<i32>} : memref<9x8x16xf32, #tpu.memory_space<vmem>>, vector<1x8x16xf32>,
    %247 = vector.extract_strided_slice %216 {offsets = [0, 1, 0], sizes = [4, 8, 16], strides = [1, 1, 1]} : vector<4x10x16xf32> to vector<4x8x16xf32>
    %248 = vector.extract_strided_slice %4 {offsets = [0, 0, 0], sizes = [1, 8, 16], strides = [1, 1, 1]} : vector<4x8x16xf32> to vector<1x8x16xf32>
    %249 = vector.shape_cast %248 : vector<1x8x16xf32> to vector<8x16xf32>
    %250 = vector.extract_strided_slice %247 {offsets = [0, 0, 0], sizes = [1, 8, 16], strides = [1, 1, 1]} : vector<4x8x16xf32> to vector<1x8x16xf32>
    %251 = vector.shape_cast %250 : vector<1x8x16xf32> to vector<8x16xf32>
    %252 = arith.mulf %249, %251 : vector<8x16xf32>
    %253 = vector.extract_strided_slice %4 {offsets = [1, 0, 0], sizes = [1, 8, 16], strides = [1, 1, 1]} : vector<4x8x16xf32> to vector<1x8x16xf32>
    %254 = vector.shape_cast %253 : vector<1x8x16xf32> to vector<8x16xf32>
    %255 = vector.extract_strided_slice %247 {offsets = [1, 0, 0], sizes = [1, 8, 16], strides = [1, 1, 1]} : vector<4x8x16xf32> to vector<1x8x16xf32>
    %256 = vector.shape_cast %255 : vector<1x8x16xf32> to vector<8x16xf32>
    %257 = arith.mulf %254, %256 : vector<8x16xf32>
    %258 = arith.addf %252, %257 : vector<8x16xf32>
    %259 = vector.extract_strided_slice %4 {offsets = [2, 0, 0], sizes = [1, 8, 16], strides = [1, 1, 1]} : vector<4x8x16xf32> to vector<1x8x16xf32>
    %260 = vector.shape_cast %259 : vector<1x8x16xf32> to vector<8x16xf32>
    %261 = vector.extract_strided_slice %247 {offsets = [2, 0, 0], sizes = [1, 8, 16], strides = [1, 1, 1]} : vector<4x8x16xf32> to vector<1x8x16xf32>
    %262 = vector.shape_cast %261 : vector<1x8x16xf32> to vector<8x16xf32>
    %263 = arith.mulf %260, %262 : vector<8x16xf32>
    %264 = arith.addf %258, %263 : vector<8x16xf32>
    %265 = vector.extract_strided_slice %4 {offsets = [3, 0, 0], sizes = [1, 8, 16], strides = [1, 1, 1]} : vector<4x8x16xf32> to vector<1x8x16xf32>
    %266 = vector.shape_cast %265 : vector<1x8x16xf32> to vector<8x16xf32>
    %267 = vector.extract_strided_slice %247 {offsets = [3, 0, 0], sizes = [1, 8, 16], strides = [1, 1, 1]} : vector<4x8x16xf32> to vector<1x8x16xf32>
    %268 = vector.shape_cast %267 : vector<1x8x16xf32> to vector<8x16xf32>
    %269 = arith.mulf %266, %268 : vector<8x16xf32>
    %270 = arith.addf %264, %269 : vector<8x16xf32>
    %c5 = arith.constant 5 : index
    %c0_57 = arith.constant 0 : index
    %c0_58 = arith.constant 0 : index
    %271 = vector.load %arg8[%c5, %c0_57, %c0_58] : memref<9x8x16xf32, #tpu.memory_space<vmem>>, vector<1x8x16xf32>
    %272 = vector.shape_cast %271 : vector<1x8x16xf32> to vector<8x16xf32>
    %273 = arith.addf %272, %270 : vector<8x16xf32>
    %c5_59 = arith.constant 5 : index
    %c0_60 = arith.constant 0 : index
    %c0_61 = arith.constant 0 : index
    %274 = vector.load %arg8[%c5_59, %c0_60, %c0_61] : memref<9x8x16xf32, #tpu.memory_space<vmem>>, vector<1x8x16xf32>
    %275 = vector.shape_cast %274 : vector<1x8x16xf32> to vector<8x16xf32>
    %276 = vector.shape_cast %273 : vector<8x16xf32> to vector<1x8x16xf32>
    tpu.vector_store %arg8[%c5_59, %c0_60, %c0_61], %276 {strides = array<i32>} : memref<9x8x16xf32, #tpu.memory_space<vmem>>, vector<1x8x16xf32>,
    %277 = vector.extract_strided_slice %216 {offsets = [0, 2, 0], sizes = [4, 8, 16], strides = [1, 1, 1]} : vector<4x10x16xf32> to vector<4x8x16xf32>
    %278 = vector.extract_strided_slice %4 {offsets = [0, 0, 0], sizes = [1, 8, 16], strides = [1, 1, 1]} : vector<4x8x16xf32> to vector<1x8x16xf32>
    %279 = vector.shape_cast %278 : vector<1x8x16xf32> to vector<8x16xf32>
    %280 = vector.extract_strided_slice %277 {offsets = [0, 0, 0], sizes = [1, 8, 16], strides = [1, 1, 1]} : vector<4x8x16xf32> to vector<1x8x16xf32>
    %281 = vector.shape_cast %280 : vector<1x8x16xf32> to vector<8x16xf32>
    %282 = arith.mulf %279, %281 : vector<8x16xf32>
    %283 = vector.extract_strided_slice %4 {offsets = [1, 0, 0], sizes = [1, 8, 16], strides = [1, 1, 1]} : vector<4x8x16xf32> to vector<1x8x16xf32>
    %284 = vector.shape_cast %283 : vector<1x8x16xf32> to vector<8x16xf32>
    %285 = vector.extract_strided_slice %277 {offsets = [1, 0, 0], sizes = [1, 8, 16], strides = [1, 1, 1]} : vector<4x8x16xf32> to vector<1x8x16xf32>
    %286 = vector.shape_cast %285 : vector<1x8x16xf32> to vector<8x16xf32>
    %287 = arith.mulf %284, %286 : vector<8x16xf32>
    %288 = arith.addf %282, %287 : vector<8x16xf32>
    %289 = vector.extract_strided_slice %4 {offsets = [2, 0, 0], sizes = [1, 8, 16], strides = [1, 1, 1]} : vector<4x8x16xf32> to vector<1x8x16xf32>
    %290 = vector.shape_cast %289 : vector<1x8x16xf32> to vector<8x16xf32>
    %291 = vector.extract_strided_slice %277 {offsets = [2, 0, 0], sizes = [1, 8, 16], strides = [1, 1, 1]} : vector<4x8x16xf32> to vector<1x8x16xf32>
    %292 = vector.shape_cast %291 : vector<1x8x16xf32> to vector<8x16xf32>
    %293 = arith.mulf %290, %292 : vector<8x16xf32>
    %294 = arith.addf %288, %293 : vector<8x16xf32>
    %295 = vector.extract_strided_slice %4 {offsets = [3, 0, 0], sizes = [1, 8, 16], strides = [1, 1, 1]} : vector<4x8x16xf32> to vector<1x8x16xf32>
    %296 = vector.shape_cast %295 : vector<1x8x16xf32> to vector<8x16xf32>
    %297 = vector.extract_strided_slice %277 {offsets = [3, 0, 0], sizes = [1, 8, 16], strides = [1, 1, 1]} : vector<4x8x16xf32> to vector<1x8x16xf32>
    %298 = vector.shape_cast %297 : vector<1x8x16xf32> to vector<8x16xf32>
    %299 = arith.mulf %296, %298 : vector<8x16xf32>
    %300 = arith.addf %294, %299 : vector<8x16xf32>
    %c8 = arith.constant 8 : index
    %c0_62 = arith.constant 0 : index
    %c0_63 = arith.constant 0 : index
    %301 = vector.load %arg8[%c8, %c0_62, %c0_63] : memref<9x8x16xf32, #tpu.memory_space<vmem>>, vector<1x8x16xf32>
    %302 = vector.shape_cast %301 : vector<1x8x16xf32> to vector<8x16xf32>
    %303 = arith.addf %302, %300 : vector<8x16xf32>
    %c8_64 = arith.constant 8 : index
    %c0_65 = arith.constant 0 : index
    %c0_66 = arith.constant 0 : index
    %304 = vector.load %arg8[%c8_64, %c0_65, %c0_66] : memref<9x8x16xf32, #tpu.memory_space<vmem>>, vector<1x8x16xf32>
    %305 = vector.shape_cast %304 : vector<1x8x16xf32> to vector<8x16xf32>
    %306 = vector.shape_cast %303 : vector<8x16xf32> to vector<1x8x16xf32>
    tpu.vector_store %arg8[%c8_64, %c0_65, %c0_66], %306 {strides = array<i32>} : memref<9x8x16xf32, #tpu.memory_space<vmem>>, vector<1x8x16xf32>,
    %c0_i32_67 = arith.constant 0 : i32
    %307 = arith.cmpi eq, %arg2, %c0_i32_67 : i32
    %308 = arith.extui %307 : i1 to i32
    %c0_i32_68 = arith.constant 0 : i32
    %309 = arith.cmpi ne, %308, %c0_i32_68 : i32
    scf.if %309 {
      %310 = tpu.iota {dimensions = array<i32: 1>} : vector<8x16xi32>
      %c-1_i32 = arith.constant -1 : i32
      %311 = vector.broadcast %c-1_i32 : i32 to vector<8x16xi32>
      %312 = arith.addi %310, %311 : vector<8x16xi32>
      %c0_i32_69 = arith.constant 0 : i32
      %313 = vector.broadcast %c0_i32_69 : i32 to vector<8x16xi32>
      %314 = arith.cmpi sge, %312, %313 : vector<8x16xi32>
      %c-1_i32_70 = arith.constant -1 : i32
      %315 = vector.broadcast %c-1_i32_70 : i32 to vector<8x16xi32>
      %316 = arith.addi %310, %315 : vector<8x16xi32>
      %c16_i32_71 = arith.constant 16 : i32
      %317 = vector.broadcast %c16_i32_71 : i32 to vector<8x16xi32>
      %318 = arith.cmpi slt, %316, %317 : vector<8x16xi32>
      %319 = arith.andi %314, %318 : vector<8x16xi1>
      %c0_72 = arith.constant 0 : index
      %c0_73 = arith.constant 0 : index
      %c0_74 = arith.constant 0 : index
      %320 = vector.load %arg8[%c0_72, %c0_73, %c0_74] : memref<9x8x16xf32, #tpu.memory_space<vmem>>, vector<1x8x16xf32>
      %321 = vector.shape_cast %320 : vector<1x8x16xf32> to vector<8x16xf32>
      %cst = arith.constant 0.000000e+00 : f32
      %322 = vector.broadcast %cst : f32 to vector<8x16xf32>
      %323 = arith.select %319, %321, %322 : vector<8x16xi1>, vector<8x16xf32>
      %c0_75 = arith.constant 0 : index
      %c0_76 = arith.constant 0 : index
      %c0_77 = arith.constant 0 : index
      %c0_78 = arith.constant 0 : index
      %324 = vector.load %arg7[%c0_75, %c0_76, %c0_77, %c0_78] : memref<1x9x8x16xf32, #tpu.memory_space<vmem>>, vector<1x1x8x16xf32>
      %325 = vector.shape_cast %324 : vector<1x1x8x16xf32> to vector<8x16xf32>
      %326 = vector.shape_cast %323 : vector<8x16xf32> to vector<1x1x8x16xf32>
      tpu.vector_store %arg7[%c0_75, %c0_76, %c0_77, %c0_78], %326 {strides = array<i32>} : memref<1x9x8x16xf32, #tpu.memory_space<vmem>>, vector<1x1x8x16xf32>,
      %c1_79 = arith.constant 1 : index
      %c0_80 = arith.constant 0 : index
      %c0_81 = arith.constant 0 : index
      %327 = vector.load %arg8[%c1_79, %c0_80, %c0_81] : memref<9x8x16xf32, #tpu.memory_space<vmem>>, vector<1x8x16xf32>
      %328 = vector.shape_cast %327 : vector<1x8x16xf32> to vector<8x16xf32>
      %c0_82 = arith.constant 0 : index
      %c1_83 = arith.constant 1 : index
      %c0_84 = arith.constant 0 : index
      %c0_85 = arith.constant 0 : index
      %329 = vector.load %arg7[%c0_82, %c1_83, %c0_84, %c0_85] : memref<1x9x8x16xf32, #tpu.memory_space<vmem>>, vector<1x1x8x16xf32>
      %330 = vector.shape_cast %329 : vector<1x1x8x16xf32> to vector<8x16xf32>
      %331 = vector.shape_cast %328 : vector<8x16xf32> to vector<1x1x8x16xf32>
      tpu.vector_store %arg7[%c0_82, %c1_83, %c0_84, %c0_85], %331 {strides = array<i32>} : memref<1x9x8x16xf32, #tpu.memory_space<vmem>>, vector<1x1x8x16xf32>,
      %c1_i32_86 = arith.constant 1 : i32
      %332 = vector.broadcast %c1_i32_86 : i32 to vector<8x16xi32>
      %333 = arith.addi %310, %332 : vector<8x16xi32>
      %c0_i32_87 = arith.constant 0 : i32
      %334 = vector.broadcast %c0_i32_87 : i32 to vector<8x16xi32>
      %335 = arith.cmpi sge, %333, %334 : vector<8x16xi32>
      %c1_i32_88 = arith.constant 1 : i32
      %336 = vector.broadcast %c1_i32_88 : i32 to vector<8x16xi32>
      %337 = arith.addi %310, %336 : vector<8x16xi32>
      %c16_i32_89 = arith.constant 16 : i32
      %338 = vector.broadcast %c16_i32_89 : i32 to vector<8x16xi32>
      %339 = arith.cmpi slt, %337, %338 : vector<8x16xi32>
      %340 = arith.andi %335, %339 : vector<8x16xi1>
      %c2_90 = arith.constant 2 : index
      %c0_91 = arith.constant 0 : index
      %c0_92 = arith.constant 0 : index
      %341 = vector.load %arg8[%c2_90, %c0_91, %c0_92] : memref<9x8x16xf32, #tpu.memory_space<vmem>>, vector<1x8x16xf32>
      %342 = vector.shape_cast %341 : vector<1x8x16xf32> to vector<8x16xf32>
      %cst_93 = arith.constant 0.000000e+00 : f32
      %343 = vector.broadcast %cst_93 : f32 to vector<8x16xf32>
      %344 = arith.select %340, %342, %343 : vector<8x16xi1>, vector<8x16xf32>
      %c0_94 = arith.constant 0 : index
      %c2_95 = arith.constant 2 : index
      %c0_96 = arith.constant 0 : index
      %c0_97 = arith.constant 0 : index
      %345 = vector.load %arg7[%c0_94, %c2_95, %c0_96, %c0_97] : memref<1x9x8x16xf32, #tpu.memory_space<vmem>>, vector<1x1x8x16xf32>
      %346 = vector.shape_cast %345 : vector<1x1x8x16xf32> to vector<8x16xf32>
      %347 = vector.shape_cast %344 : vector<8x16xf32> to vector<1x1x8x16xf32>
      tpu.vector_store %arg7[%c0_94, %c2_95, %c0_96, %c0_97], %347 {strides = array<i32>} : memref<1x9x8x16xf32, #tpu.memory_space<vmem>>, vector<1x1x8x16xf32>,
      %c-1_i32_98 = arith.constant -1 : i32
      %348 = vector.broadcast %c-1_i32_98 : i32 to vector<8x16xi32>
      %349 = arith.addi %310, %348 : vector<8x16xi32>
      %c0_i32_99 = arith.constant 0 : i32
      %350 = vector.broadcast %c0_i32_99 : i32 to vector<8x16xi32>
      %351 = arith.cmpi sge, %349, %350 : vector<8x16xi32>
      %c-1_i32_100 = arith.constant -1 : i32
      %352 = vector.broadcast %c-1_i32_100 : i32 to vector<8x16xi32>
      %353 = arith.addi %310, %352 : vector<8x16xi32>
      %c16_i32_101 = arith.constant 16 : i32
      %354 = vector.broadcast %c16_i32_101 : i32 to vector<8x16xi32>
      %355 = arith.cmpi slt, %353, %354 : vector<8x16xi32>
      %356 = arith.andi %351, %355 : vector<8x16xi1>
      %c3_102 = arith.constant 3 : index
      %c0_103 = arith.constant 0 : index
      %c0_104 = arith.constant 0 : index
      %357 = vector.load %arg8[%c3_102, %c0_103, %c0_104] : memref<9x8x16xf32, #tpu.memory_space<vmem>>, vector<1x8x16xf32>
      %358 = vector.shape_cast %357 : vector<1x8x16xf32> to vector<8x16xf32>
      %cst_105 = arith.constant 0.000000e+00 : f32
      %359 = vector.broadcast %cst_105 : f32 to vector<8x16xf32>
      %360 = arith.select %356, %358, %359 : vector<8x16xi1>, vector<8x16xf32>
      %c0_106 = arith.constant 0 : index
      %c3_107 = arith.constant 3 : index
      %c0_108 = arith.constant 0 : index
      %c0_109 = arith.constant 0 : index
      %361 = vector.load %arg7[%c0_106, %c3_107, %c0_108, %c0_109] : memref<1x9x8x16xf32, #tpu.memory_space<vmem>>, vector<1x1x8x16xf32>
      %362 = vector.shape_cast %361 : vector<1x1x8x16xf32> to vector<8x16xf32>
      %363 = vector.shape_cast %360 : vector<8x16xf32> to vector<1x1x8x16xf32>
      tpu.vector_store %arg7[%c0_106, %c3_107, %c0_108, %c0_109], %363 {strides = array<i32>} : memref<1x9x8x16xf32, #tpu.memory_space<vmem>>, vector<1x1x8x16xf32>,
      %c4_110 = arith.constant 4 : index
      %c0_111 = arith.constant 0 : index
      %c0_112 = arith.constant 0 : index
      %364 = vector.load %arg8[%c4_110, %c0_111, %c0_112] : memref<9x8x16xf32, #tpu.memory_space<vmem>>, vector<1x8x16xf32>
      %365 = vector.shape_cast %364 : vector<1x8x16xf32> to vector<8x16xf32>
      %c0_113 = arith.constant 0 : index
      %c4_114 = arith.constant 4 : index
      %c0_115 = arith.constant 0 : index
      %c0_116 = arith.constant 0 : index
      %366 = vector.load %arg7[%c0_113, %c4_114, %c0_115, %c0_116] : memref<1x9x8x16xf32, #tpu.memory_space<vmem>>, vector<1x1x8x16xf32>
      %367 = vector.shape_cast %366 : vector<1x1x8x16xf32> to vector<8x16xf32>
      %368 = vector.shape_cast %365 : vector<8x16xf32> to vector<1x1x8x16xf32>
      tpu.vector_store %arg7[%c0_113, %c4_114, %c0_115, %c0_116], %368 {strides = array<i32>} : memref<1x9x8x16xf32, #tpu.memory_space<vmem>>, vector<1x1x8x16xf32>,
      %c1_i32_117 = arith.constant 1 : i32
      %369 = vector.broadcast %c1_i32_117 : i32 to vector<8x16xi32>
      %370 = arith.addi %310, %369 : vector<8x16xi32>
      %c0_i32_118 = arith.constant 0 : i32
      %371 = vector.broadcast %c0_i32_118 : i32 to vector<8x16xi32>
      %372 = arith.cmpi sge, %370, %371 : vector<8x16xi32>
      %c1_i32_119 = arith.constant 1 : i32
      %373 = vector.broadcast %c1_i32_119 : i32 to vector<8x16xi32>
      %374 = arith.addi %310, %373 : vector<8x16xi32>
      %c16_i32_120 = arith.constant 16 : i32
      %375 = vector.broadcast %c16_i32_120 : i32 to vector<8x16xi32>
      %376 = arith.cmpi slt, %374, %375 : vector<8x16xi32>
      %377 = arith.andi %372, %376 : vector<8x16xi1>
      %c5_121 = arith.constant 5 : index
      %c0_122 = arith.constant 0 : index
      %c0_123 = arith.constant 0 : index
      %378 = vector.load %arg8[%c5_121, %c0_122, %c0_123] : memref<9x8x16xf32, #tpu.memory_space<vmem>>, vector<1x8x16xf32>
      %379 = vector.shape_cast %378 : vector<1x8x16xf32> to vector<8x16xf32>
      %cst_124 = arith.constant 0.000000e+00 : f32
      %380 = vector.broadcast %cst_124 : f32 to vector<8x16xf32>
      %381 = arith.select %377, %379, %380 : vector<8x16xi1>, vector<8x16xf32>
      %c0_125 = arith.constant 0 : index
      %c5_126 = arith.constant 5 : index
      %c0_127 = arith.constant 0 : index
      %c0_128 = arith.constant 0 : index
      %382 = vector.load %arg7[%c0_125, %c5_126, %c0_127, %c0_128] : memref<1x9x8x16xf32, #tpu.memory_space<vmem>>, vector<1x1x8x16xf32>
      %383 = vector.shape_cast %382 : vector<1x1x8x16xf32> to vector<8x16xf32>
      %384 = vector.shape_cast %381 : vector<8x16xf32> to vector<1x1x8x16xf32>
      tpu.vector_store %arg7[%c0_125, %c5_126, %c0_127, %c0_128], %384 {strides = array<i32>} : memref<1x9x8x16xf32, #tpu.memory_space<vmem>>, vector<1x1x8x16xf32>,
      %c-1_i32_129 = arith.constant -1 : i32
      %385 = vector.broadcast %c-1_i32_129 : i32 to vector<8x16xi32>
      %386 = arith.addi %310, %385 : vector<8x16xi32>
      %c0_i32_130 = arith.constant 0 : i32
      %387 = vector.broadcast %c0_i32_130 : i32 to vector<8x16xi32>
      %388 = arith.cmpi sge, %386, %387 : vector<8x16xi32>
      %c-1_i32_131 = arith.constant -1 : i32
      %389 = vector.broadcast %c-1_i32_131 : i32 to vector<8x16xi32>
      %390 = arith.addi %310, %389 : vector<8x16xi32>
      %c16_i32_132 = arith.constant 16 : i32
      %391 = vector.broadcast %c16_i32_132 : i32 to vector<8x16xi32>
      %392 = arith.cmpi slt, %390, %391 : vector<8x16xi32>
      %393 = arith.andi %388, %392 : vector<8x16xi1>
      %c6_133 = arith.constant 6 : index
      %c0_134 = arith.constant 0 : index
      %c0_135 = arith.constant 0 : index
      %394 = vector.load %arg8[%c6_133, %c0_134, %c0_135] : memref<9x8x16xf32, #tpu.memory_space<vmem>>, vector<1x8x16xf32>
      %395 = vector.shape_cast %394 : vector<1x8x16xf32> to vector<8x16xf32>
      %cst_136 = arith.constant 0.000000e+00 : f32
      %396 = vector.broadcast %cst_136 : f32 to vector<8x16xf32>
      %397 = arith.select %393, %395, %396 : vector<8x16xi1>, vector<8x16xf32>
      %c0_137 = arith.constant 0 : index
      %c6_138 = arith.constant 6 : index
      %c0_139 = arith.constant 0 : index
      %c0_140 = arith.constant 0 : index
      %398 = vector.load %arg7[%c0_137, %c6_138, %c0_139, %c0_140] : memref<1x9x8x16xf32, #tpu.memory_space<vmem>>, vector<1x1x8x16xf32>
      %399 = vector.shape_cast %398 : vector<1x1x8x16xf32> to vector<8x16xf32>
      %400 = vector.shape_cast %397 : vector<8x16xf32> to vector<1x1x8x16xf32>
      tpu.vector_store %arg7[%c0_137, %c6_138, %c0_139, %c0_140], %400 {strides = array<i32>} : memref<1x9x8x16xf32, #tpu.memory_space<vmem>>, vector<1x1x8x16xf32>,
      %c7_141 = arith.constant 7 : index
      %c0_142 = arith.constant 0 : index
      %c0_143 = arith.constant 0 : index
      %401 = vector.load %arg8[%c7_141, %c0_142, %c0_143] : memref<9x8x16xf32, #tpu.memory_space<vmem>>, vector<1x8x16xf32>
      %402 = vector.shape_cast %401 : vector<1x8x16xf32> to vector<8x16xf32>
      %c0_144 = arith.constant 0 : index
      %c7_145 = arith.constant 7 : index
      %c0_146 = arith.constant 0 : index
      %c0_147 = arith.constant 0 : index
      %403 = vector.load %arg7[%c0_144, %c7_145, %c0_146, %c0_147] : memref<1x9x8x16xf32, #tpu.memory_space<vmem>>, vector<1x1x8x16xf32>
      %404 = vector.shape_cast %403 : vector<1x1x8x16xf32> to vector<8x16xf32>
      %405 = vector.shape_cast %402 : vector<8x16xf32> to vector<1x1x8x16xf32>
      tpu.vector_store %arg7[%c0_144, %c7_145, %c0_146, %c0_147], %405 {strides = array<i32>} : memref<1x9x8x16xf32, #tpu.memory_space<vmem>>, vector<1x1x8x16xf32>,
      %c1_i32_148 = arith.constant 1 : i32
      %406 = vector.broadcast %c1_i32_148 : i32 to vector<8x16xi32>
      %407 = arith.addi %310, %406 : vector<8x16xi32>
      %c0_i32_149 = arith.constant 0 : i32
      %408 = vector.broadcast %c0_i32_149 : i32 to vector<8x16xi32>
      %409 = arith.cmpi sge, %407, %408 : vector<8x16xi32>
      %c1_i32_150 = arith.constant 1 : i32
      %410 = vector.broadcast %c1_i32_150 : i32 to vector<8x16xi32>
      %411 = arith.addi %310, %410 : vector<8x16xi32>
      %c16_i32_151 = arith.constant 16 : i32
      %412 = vector.broadcast %c16_i32_151 : i32 to vector<8x16xi32>
      %413 = arith.cmpi slt, %411, %412 : vector<8x16xi32>
      %414 = arith.andi %409, %413 : vector<8x16xi1>
      %c8_152 = arith.constant 8 : index
      %c0_153 = arith.constant 0 : index
      %c0_154 = arith.constant 0 : index
      %415 = vector.load %arg8[%c8_152, %c0_153, %c0_154] : memref<9x8x16xf32, #tpu.memory_space<vmem>>, vector<1x8x16xf32>
      %416 = vector.shape_cast %415 : vector<1x8x16xf32> to vector<8x16xf32>
      %cst_155 = arith.constant 0.000000e+00 : f32
      %417 = vector.broadcast %cst_155 : f32 to vector<8x16xf32>
      %418 = arith.select %414, %416, %417 : vector<8x16xi1>, vector<8x16xf32>
      %c0_156 = arith.constant 0 : index
      %c8_157 = arith.constant 8 : index
      %c0_158 = arith.constant 0 : index
      %c0_159 = arith.constant 0 : index
      %419 = vector.load %arg7[%c0_156, %c8_157, %c0_158, %c0_159] : memref<1x9x8x16xf32, #tpu.memory_space<vmem>>, vector<1x1x8x16xf32>
      %420 = vector.shape_cast %419 : vector<1x1x8x16xf32> to vector<8x16xf32>
      %421 = vector.shape_cast %418 : vector<8x16xf32> to vector<1x1x8x16xf32>
      tpu.vector_store %arg7[%c0_156, %c8_157, %c0_158, %c0_159], %421 {strides = array<i32>} : memref<1x9x8x16xf32, #tpu.memory_space<vmem>>, vector<1x1x8x16xf32>,
    } else {
    }
    return
  }
  func.func @transform_0(%arg0: i32, %arg1: i32, %arg2: i32) -> (i32, i32, i32, i32) {
    %c0_i32 = arith.constant 0 : i32
    %c0_i32_0 = arith.constant 0 : i32
    return %arg0, %arg2, %arg1, %c0_i32 : i32, i32, i32, i32
  }
  func.func @transform_1(%arg0: i32, %arg1: i32, %arg2: i32) -> (i32, i32, i32, i32) {
    %c0_i32 = arith.constant 0 : i32
    %c0_i32_0 = arith.constant 0 : i32
    return %arg0, %arg2, %arg1, %c0_i32 : i32, i32, i32, i32
  }
  func.func @transform_2(%arg0: i32, %arg1: i32, %arg2: i32) -> (i32, i32, i32, i32) {
    %c1_i32 = arith.constant 1 : i32
    %0 = arith.muli %arg1, %c1_i32 : i32
    %c1_i32_0 = arith.constant 1 : i32
    %1 = arith.subi %0, %c1_i32_0 : i32
    %c0_i32 = arith.constant 0 : i32
    %2 = arith.maxsi %1, %c0_i32 : i32
    %c0_i32_1 = arith.constant 0 : i32
    %c0_i32_2 = arith.constant 0 : i32
    return %arg0, %arg2, %2, %c0_i32_1 : i32, i32, i32, i32
  }
  func.func @transform_3(%arg0: i32, %arg1: i32, %arg2: i32) -> (i32, i32, i32, i32) {
    %c1_i32 = arith.constant 1 : i32
    %0 = arith.addi %arg1, %c1_i32 : i32
    %c1_i32_0 = arith.constant 1 : i32
    %1 = arith.muli %0, %c1_i32_0 : i32
    %c1_i32_1 = arith.constant 1 : i32
    %2 = arith.minsi %1, %c1_i32_1 : i32
    %c0_i32 = arith.constant 0 : i32
    %c0_i32_2 = arith.constant 0 : i32
    return %arg0, %arg2, %2, %c0_i32 : i32, i32, i32, i32
  }
  func.func @transform_4(%arg0: i32, %arg1: i32, %arg2: i32) -> (i32, i32, i32, i32) {
    %c0_i32 = arith.constant 0 : i32
    %c0_i32_0 = arith.constant 0 : i32
    %c0_i32_1 = arith.constant 0 : i32
    return %arg0, %c0_i32, %arg1, %c0_i32_0 : i32, i32, i32, i32
  }
}

</mosaic_0001>

<bundles_post_ra>
// kernel: tpu_custom_call.1
= control target key start
LH: loop header
LB: loop body
LE: loop exit
PB: predicated region body
PF: predicated region fallthrough
CT: control target
= control target key end

     0   :  { %s2326_s0 = inlined_call_operand.hbm [shape: f32[2,4,16,16], index: 0, kind: input, shape index: {}]   ;;  %s2327_s1 = inlined_call_operand.hbm [shape: f32[2,4,16,16], index: 1, kind: input, shape index: {}]   ;;  %s2328_s2 = inlined_call_operand.hbm [shape: f32[2,4,16,16], index: 2, kind: input, shape index: {}]   ;;  %s2329_s3 = inlined_call_operand.hbm [shape: f32[2,4,16,16], index: 3, kind: input, shape index: {}]   ;;  %s2330_s4 = inlined_call_operand.hbm [shape: f32[2,9,16,16], index: 4, kind: output, shape index: {}]  }
   0x1   :  { %2355 = sst [smem:[#allocation24_spill]] %s2326_s0 }
   0x2   :  { %2356 = sst [smem:[#allocation25_spill]] %s2327_s1 }
   0x3   :  { %2357 = sst [smem:[#allocation26_spill]] %s2328_s2 }
   0x4   :  { %2358 = sst [smem:[#allocation27_spill]] %s2330_s4 }
   0x5   :  { %9 = vsyncpa [#allocation4], 0 }
   0x6   :  { %11 = vsyncpa [#allocation4 + $0x1], 0 }
   0x7   :  { %12 = vsyncpa [#allocation7], 0 }
   0x8   :  { %14 = vsyncpa [#allocation7 + $0x1], 0 }
   0x9   :  { %15 = vsyncpa [#allocation10], 0 }
   0xa   :  { %17 = vsyncpa [#allocation10 + $0x1], 0 }
   0xb   :  { %18 = vsyncpa [#allocation5], 0 }
   0xc   :  { %20 = vsyncpa [#allocation5 + $0x1], 0  ;;  %s1582_s15 = smov 0   ;;  %s1584_s16 = smov 0  }
   0xd   :  { %s1586_s17 = smov 0   ;;  %s1588_s18 = smov 0  }
   0xe   :  { %s1590_s19 = smov 0   ;;  %s1592_s20 = smov 0  }
   0xf   :  { %s1594_s21 = smov 0   ;;  %s1596_s22 = smov 0  }
  0x10   :  { %s1598_s23 = smov 0   ;;  %s1600_s24 = smov 0  }
  0x11   :  { %s1602_s25 = smov 0   ;;  %s1604_s26 = smov 0  }
  0x12   :  { %s1606_s27 = smov 0   ;;  %s1608_s28 = smov 0  }
  0x13 LB: > { %2359 = sst [smem:[#allocation17_spill]] %s1511_s21  ;;  %s1653_s29 = sadd.s32 4294967295, %s1539_s28   ;;  %s1539_s28 = sphi %s1608_s28, %s26_s28   ;;  %s1535_s27 = sphi %s1606_s27, %s2423_s27   ;;  %s1531_s26 = sphi %s1604_s26, %s2422_s26   ;;  %s1527_s25 = sphi %s1602_s25, %s2421_s25   ;;  %s1523_s24 = sphi %s1600_s24, %s2420_s24   ;;  %s1519_s23 = sphi %s1598_s23, %s2419_s23   ;;  %s1515_s22 = sphi %s1596_s22, %s2418_s22   ;;  %s1511_s21 = sphi %s1594_s21, %s2417_s21   ;;  %s1507_s20 = sphi %s1592_s20, %s2416_s20   ;;  %s1503_s19 = sphi %s1590_s19, %s2415_s19   ;;  %s1499_s18 = sphi %s1588_s18, %s2414_s18   ;;  %s1495_s17 = sphi %s1586_s17, %s2413_s17   ;;  %s1491_s16 = sphi %s1584_s16, %s2412_s16   ;;  %s1487_s15 = sphi %s1582_s15, %s2411_s15  }
  0x14   : > { %2360 = sst [smem:[#allocation18_spill]] %s1523_s24  ;;  %s1064_s30 = sadd.s32 4294967294, %s1539_s28  }
  0x15   : > { %2361 = sst [smem:[#allocation19_spill]] %s1527_s25  ;;  %p63_p0 = scmp.ne.s32.totalorder %s1519_s23, %s1515_s22 }
  0x16   : > { %p2340_p1 = scmp.eq.s32.totalorder %s1539_s28, 0  ;;  %p69_p2 = scmp.ne.s32.totalorder %s1515_s22, %s1511_s21 }
  0x17   : > { %p2339_p3 = scmp.eq.s32.totalorder %s1653_s29, 0  ;;  %p197_p5 = scmp.eq.s32.totalorder %s1653_s29, 3 }
  0x18   : > { %p65_p4 = por %p2340_p1, %p63_p0  ;;  %p203_p7 = scmp.eq.s32.totalorder %s1064_s30, 3 }
  0x19   : > { %p1669_p6 = por %p2339_p3, %p69_p2  ;;  %p1673_p8 = por %p197_p5, %p63_p0 }
  0x1a   : > { %p1677_p9 = por %p203_p7, %p69_p2  ;;  %p2338_p10 = scmp.lt.s32.totalorder %s1539_s28, 4 }
  0x1b   : > { %s2362_s7 = scalar_select %p1669_p6, 1, 0 }
  0x1c   : > { %s2364_s8 = scalar_select %p1673_p8, 1, 0 }
  0x1d   : > { %2363 = sst [smem:[#allocation20_spill]] %s2362_s7  ;;  %s2332_s10 = sand.u32 1, %s1519_s23  }
  0x1e   : > { %2365 = sst [smem:[#allocation21_spill]] %s2364_s8  ;;  %s1070_s11 = sshll.u32 %s1535_s27, 3 }
  0x1f   : > { %s2366_s9 = scalar_select %p1677_p9, 1, 0 }
  0x20   : > { %s1686_s12 = sshll.u32 %s2332_s10, 5  ;;  %s1689_s13 = sadd.s32 %s1531_s26, %s1070_s11 }
  0x21   : > { %2367 = sst [smem:[#allocation22_spill]] %s2366_s9  ;;  %s2337_s14 = sshll.u32 %s1689_s13, 7 }
  0x22   : > { %p1694_p11 = pnand %p2338_p10, %p65_p4  ;;  %s248_s6 = sand.u32 1, %s1539_s28  }
  0x23   : > { %s2369_s1 = sld [smem:[#allocation25_spill]]  ;;  %s252_s11 = scalar_lea.vmem [#allocation6], %s1686_s12 }
  0x24   : > { %s263_s21 = sshll.u32 %s252_s11, 4  ;;  %s1711_s4 = scalar_lea.sflag [#allocation7], %s248_s6  ;;  %s1708_s21 = int_to_ptr.vmem [resolvable:$true] %s263_s21 }
  0x25   : > { %p1259_p2 = pneg %p1694_p11 }
  0x29   : > { %s1704_s10 = scalar_lea.hbm %s2369_s1, %s2337_s14  ;;  %s1262_s14 = scalar_lea.hbm %s2369_s1, 2048 }
  0x2a   : > { %s1257_s8 = scalar_lea.hbm %s1704_s10, 512  ;;  %p1263_p7 = scmp.lt.u32.totalorder %s1704_s10, %s2369_s1 }
  0x2b   : > { %p1258_p0 = scmp.ne.s32.totalorder %s1704_s10, %s1257_s8  ;;  %p1264_p10 = scmp.lt.u32.totalorder %s1262_s14, %s1257_s8 }
  0x2c   : > { %p1266_p1 = scmp.lt.u32.totalorder %s1257_s8, %s1704_s10 }
  0x2d   : > { %p1260_p4 = pnand %p1259_p2, %p1258_p0  ;;  %p1265_p3 = por %p1264_p10, %p1263_p7 }
  0x2f   : > { %p1261_p5 = pneg %p1260_p4  ;;  %p1267_p12 = por %p1266_p1, %p1265_p3 }
  0x31   : > { %p1268_p13 = pnand %p1267_p12, %p1261_p5 }
  0x33   : > { %1271 = shalt.err (!%p1268_p13)
}
  0x34   : > { %s1272_s6 = scalar_lea.vmem %s1708_s21, 512  ;;  %s1541_s5 = smov [#allocation6]  }
  0x35   : > { %p1273_p0 = scmp.ne.s32.totalorder %s1708_s21, %s1272_s6  ;;  %s1277_s9 = sshll.u32 %s1541_s5, 4  ;;  %s1278_s9 = int_to_ptr.vmem [resolvable:$false] %s1277_s9 }
  0x36   : > { %s1279_s25 = scalar_lea.vmem %s1278_s9, 1024  ;;  %p1280_p8 = scmp.lt.s32.totalorder %s1708_s21, %s1278_s9 }
  0x37   : > { %p1275_p4 = pnand %p1273_p0, %p1259_p2  ;;  %p1281_p10 = scmp.lt.s32.totalorder %s1279_s25, %s1272_s6 }
  0x39   : > { %p1276_p9 = pneg %p1275_p4  ;;  %p1282_p7 = por %p1281_p10, %p1280_p8 }
  0x3b   : > { %p1283_p1 = pnand %p1282_p7, %p1276_p9 }
  0x3d   : > { %1286 = shalt.err (!%p1283_p1)
}
  0x3e   : > { %s2345_s8 = smov 256   ;;  %s2347_s14 = smov 128  }
  0x3f   : > { %s2352_s11 = smov 8   ;;  %p2370_p3 = scmp.lt.s32.totalorder %s1539_s28, 5 }
  0x40   : > { %1121 = dma.hbm_to_vmem [thread:$0]  (!%p1694_p11), %s1704_s10, 512, %s1708_s21, %s1711_s4, %s2345_s8, %s2347_s14, %s2352_s11  }
  0x41   : > { %p2371_p8 = scmp.ge.s32.totalorder %s1539_s28, 1  ;;  %s2373_s5 = sshll.u32 %s1689_s13, 7 }
  0x42   : > { %s2374_s0 = sld [smem:[#allocation24_spill]]  ;;  %s227_s24 = scalar_lea.vmem [#allocation3], %s1686_s12 }
  0x43   : > { %p1746_p9 = pnand %p2371_p8, %p2370_p3  ;;  %s238_s7 = sshll.u32 %s227_s24, 4  ;;  %s1758_s7 = int_to_ptr.vmem [resolvable:$true] %s238_s7 }
  0x44   : > { %s2375_s21 = sand.u32 1, %s1519_s23  }
  0x45   : > { %s1762_s10 = scalar_lea.sflag [#allocation4], %s2375_s21 }
  0x48   : > { %s1755_s1 = scalar_lea.hbm %s2374_s0, %s2373_s5  ;;  %s1292_s9 = scalar_lea.hbm %s2374_s0, 2048 }
  0x49   : > { %s1287_s8 = scalar_lea.hbm %s1755_s1, 512  ;;  %p1293_p0 = scmp.lt.u32.totalorder %s1755_s1, %s2374_s0 }
  0x4a   : > { %p1288_p12 = scmp.ne.s32.totalorder %s1755_s1, %s1287_s8  ;;  %p1294_p4 = scmp.lt.u32.totalorder %s1292_s9, %s1287_s8 }
  0x4b   : > { %p1296_p7 = scmp.lt.u32.totalorder %s1287_s8, %s1755_s1 }
  0x4c   : > { %p1290_p13 = pnand %p1288_p12, %p1259_p2  ;;  %p1295_p10 = por %p1294_p4, %p1293_p0 }
  0x4e   : > { %p1291_p5 = pneg %p1290_p13  ;;  %p1297_p1 = por %p1296_p7, %p1295_p10 }
  0x50   : > { %p1298_p3 = pnand %p1297_p1, %p1291_p5 }
  0x52   : > { %1301 = shalt.err (!%p1298_p3)
}
  0x53   : > { %s1302_s24 = scalar_lea.vmem %s1758_s7, 512  ;;  %s1545_s12 = smov [#allocation3]  }
  0x54   : > { %p1303_p8 = scmp.ne.s32.totalorder %s1758_s7, %s1302_s24  ;;  %s1307_s21 = sshll.u32 %s1545_s12, 4  ;;  %s1308_s21 = int_to_ptr.vmem [resolvable:$false] %s1307_s21 }
  0x55   : > { %s1309_s14 = scalar_lea.vmem %s1308_s21, 1024  ;;  %p1310_p6 = scmp.lt.s32.totalorder %s1758_s7, %s1308_s21 }
  0x56   : > { %p1305_p12 = pnand %p1303_p8, %p1259_p2  ;;  %p1311_p0 = scmp.lt.s32.totalorder %s1309_s14, %s1302_s24 }
  0x58   : > { %p1306_p13 = pneg %p1305_p12  ;;  %p1312_p4 = por %p1311_p0, %p1310_p6 }
  0x5a   : > { %p1313_p10 = pnand %p1312_p4, %p1306_p13 }
  0x5c   : > { %1316 = shalt.err (!%p1313_p10)
}
  0x5d   : > { %s2376_s8 = smov 128   ;;  %s2377_s13 = smov 256  }
  0x5e   : > { %1118 = dma.hbm_to_vmem [thread:$0]  (!%p1694_p11), %s1755_s1, 512, %s1758_s7, %s1762_s10, %s2377_s13, %s2376_s8, %s2352_s11  }
  0x5f   : > { %s122_s5 = sadd.s32 1, %s1507_s20  ;;  %p129_p6 = scmp.ne.s32.totalorder %s1507_s20, %s1503_s19 }
  0x60   : > { %p135_p2 = scmp.ne.s32.totalorder %s1503_s19, %s1499_s18  ;;  %s275_s30 = sand.u32 1, %s1507_s20  }
  0x61   : > { %p2378_p5 = scmp.eq.s32.totalorder %s1539_s28, 0  ;;  %p2379_p1 = scmp.eq.s32.totalorder %s1653_s29, 0 }
  0x62   : > { %s1075_s25 = sshll.u32 %s275_s30, 5  ;;  %s2350_s24 = sshll.u32 %s1535_s27, 10 }
  0x63   : > { %p131_p7 = por %p129_p6, %p2378_p5  ;;  %p1801_p3 = por %p135_p2, %p2379_p1 }
  0x64   : > { %s2381_s2 = sld [smem:[#allocation26_spill]]  ;;  %s277_s1 = scalar_lea.vmem [#allocation8], %s1075_s25 }
  0x65   : > { %s2380_s9 = scalar_select %p1801_p3, 1, 0 }
  0x66   : > { %s291_s18 = sshll.u32 %s277_s1, 4  ;;  %p2382_p11 = scmp.lt.s32.totalorder %s1539_s28, 4  ;;  %s1813_s18 = int_to_ptr.vmem [resolvable:$true] %s291_s18 }
  0x68   : > { %p1817_p8 = pnand %p2382_p11, %p131_p7 }
  0x6a   : > { %s1811_s14 = scalar_lea.hbm %s2381_s2, %s2350_s24  ;;  %p1319_p13 = pneg %p1817_p8 }
  0x6b   : > { %s1317_s10 = scalar_lea.hbm %s1811_s14, 512  ;;  %s1322_s12 = scalar_lea.hbm %s2381_s2, 2048 }
  0x6c   : > { %p1318_p12 = scmp.ne.s32.totalorder %s1811_s14, %s1317_s10  ;;  %p1323_p10 = scmp.lt.u32.totalorder %s1811_s14, %s2381_s2 }
  0x6d   : > { %p1324_p6 = scmp.lt.u32.totalorder %s1322_s12, %s1317_s10  ;;  %p1326_p5 = scmp.lt.u32.totalorder %s1317_s10, %s1811_s14 }
  0x6e   : > { %p1320_p0 = pnand %p1319_p13, %p1318_p12 }
  0x6f   : > { %p1325_p2 = por %p1324_p6, %p1323_p10 }
  0x70   : > { %p1321_p4 = pneg %p1320_p0 }
  0x71   : > { %p1327_p7 = por %p1326_p5, %p1325_p2 }
  0x73   : > { %p1328_p1 = pnand %p1327_p7, %p1321_p4 }
  0x75   : > { %1331 = shalt.err (!%p1328_p1)
}
  0x76   : > { %s1332_s24 = scalar_lea.vmem %s1813_s18, 512  ;;  %s1546_s30 = smov [#allocation8]  }
  0x77   : > { %p1333_p11 = scmp.ne.s32.totalorder %s1813_s18, %s1332_s24  ;;  %s1337_s25 = sshll.u32 %s1546_s30, 4  ;;  %s1338_s25 = int_to_ptr.vmem [resolvable:$false] %s1337_s25 }
  0x78   : > { %s1339_s21 = scalar_lea.vmem %s1338_s25, 1024  ;;  %p1340_p3 = scmp.lt.s32.totalorder %s1813_s18, %s1338_s25 }
  0x79   : > { %p1335_p12 = pnand %p1333_p11, %p1319_p13  ;;  %p1341_p10 = scmp.lt.s32.totalorder %s1339_s21, %s1332_s24 }
  0x7b   : > { %p1336_p0 = pneg %p1335_p12  ;;  %p1342_p6 = por %p1341_p10, %p1340_p3 }
  0x7d   : > { %p1343_p2 = pnand %p1342_p6, %p1336_p0 }
  0x7f   : > { %1346 = shalt.err (!%p1343_p2)
}
  0x80   : > { %1124 = dma.hbm_to_vmem [thread:$0]  (!%p1817_p8), %s1811_s14, 512, %s1813_s18, %s1711_s4, %s2377_s13, %s2376_s8, %s2352_s11  }
  0x81   : > { %s41_s24 = sadd.s32 1, %s1531_s26  ;;  %s158_s7 = sadd.s32 1, %s1495_s17 }
  0x82   : > { %p43_p3 = scmp.ge.s32.totalorder %s41_s24, 2  ;;  %p165_p13 = scmp.ne.s32.totalorder %s1495_s17, %s1491_s16 }
  0x83   : > { %s2384_s10 = sadd.s32 1, %s1535_s27  ;;  %s2386_s18 = sadd.s32 1, %s1519_s23 }
  0x84   : > { %s2425_s24 = smov (%p43_p3, %s41_s24), 0  ;;  %s2427_s10 = smov (!%p43_p3, %s2384_s10), %s1535_s27 }
  0x85   : > { %s52_s12 = ssub.s32 %s1531_s26, %s2425_s24  ;;  %p47_p4 = scmp.ge.s32.totalorder %s2427_s10, 2 }
  0x86   : > { %p2387_p7 = scmp.eq.s32.totalorder %s1539_s28, 0  ;;  %p171_p11 = scmp.ne.s32.totalorder %s1491_s16, %s1487_s15 }
  0x87   : > { %s2429_s10 = smov (%p47_p4, %s2427_s10), 0  ;;  %s301_s25 = sand.u32 1, %s1495_s17  }
  0x88   : > { %2385 = sst [smem:[#allocation23_spill]] %s2429_s10  ;;  %s49_s4 = ssub.s32 %s1535_s27, %s2429_s10 }
  0x89   : > { %s53_s14 = sor.u32 %s52_s12, %s49_s4  ;;  %p120_p5 = scmp.eq.s32.totalorder %s49_s4, 0 }
  0x8a   : > { %p54_p8 = scmp.eq.s32.totalorder %s53_s14, 0  ;;  %p167_p1 = por %p165_p13, %p2387_p7 }
  0x8b   : > { %s1873_s30 = scalar_select %p120_p5, %s1507_s20, %s122_s5  }
  0x8c   : > { %s1868_s1 = scalar_select %p54_p8, %s1519_s23, %s2386_s18  }
  0x8d   : > { %p2388_p12 = scmp.eq.s32.totalorder %s1653_s29, 0  ;;  %s1079_s11 = sshll.u32 %s301_s25, 5 }
  0x8e   : > { %s1887_s12 = scalar_select %p120_p5, %s1495_s17, %s158_s7  }
  0x8f   : > { %p1882_p0 = por %p171_p11, %p2388_p12  ;;  %s2390_s14 = sshll.u32 %s1535_s27, 10 }
  0x90   : > { %s1483_s4 = sadd.s32 128, %s2390_s14  ;;  %s305_s15 = scalar_lea.vmem [#allocation9], %s1079_s11 }
  0x91   : > { %s2389_s21 = scalar_select %p1882_p0, 1, 0 }
  0x92   : > { %s1894_s2 = scalar_lea.hbm %s2329_s3, %s1483_s4  ;;  %s319_s5 = sshll.u32 %s305_s15, 4  ;;  %s1896_s5 = int_to_ptr.vmem [resolvable:$true] %s319_s5 }
  0x93   : > { %p2391_p10 = scmp.lt.s32.totalorder %s1539_s28, 4  ;;  %s1904_s7 = scalar_lea.sflag [#allocation10], %s301_s25 }
  0x94   : > { %s1347_s0 = scalar_lea.hbm %s1894_s2, 512  ;;  %s1352_s4 = scalar_lea.hbm %s2329_s3, 2048 }
  0x95   : > { %p1900_p6 = pnand %p2391_p10, %p167_p1  ;;  %p1348_p2 = scmp.ne.s32.totalorder %s1894_s2, %s1347_s0 }
  0x96   : > { %p1353_p8 = scmp.lt.u32.totalorder %s1894_s2, %s2329_s3  ;;  %p1354_p5 = scmp.lt.u32.totalorder %s1352_s4, %s1347_s0 }
  0x97   : > { %p1349_p3 = pneg %p1900_p6  ;;  %p1356_p1 = scmp.lt.u32.totalorder %s1347_s0, %s1894_s2 }
  0x98   : > { %p1355_p7 = por %p1354_p5, %p1353_p8 }
  0x99   : > { %p1350_p13 = pnand %p1349_p3, %p1348_p2 }
  0x9a   : > { %p1357_p11 = por %p1356_p1, %p1355_p7 }
  0x9b   : > { %p1351_p4 = pneg %p1350_p13 }
  0x9d   : > { %p1358_p12 = pnand %p1357_p11, %p1351_p4 }
  0x9f   : > { %1361 = shalt.err (!%p1358_p12)
}
  0xa0   : > { %s1362_s25 = scalar_lea.vmem %s1896_s5, 512  ;;  %s1547_s11 = smov [#allocation9]  }
  0xa1   : > { %p1363_p10 = scmp.ne.s32.totalorder %s1896_s5, %s1362_s25  ;;  %s1367_s14 = sshll.u32 %s1547_s11, 4  ;;  %s1368_s14 = int_to_ptr.vmem [resolvable:$false] %s1367_s14 }
  0xa2   : > { %s1369_s18 = scalar_lea.vmem %s1368_s14, 1024  ;;  %p1370_p0 = scmp.lt.s32.totalorder %s1896_s5, %s1368_s14 }
  0xa3   : > { %p1365_p2 = pnand %p1363_p10, %p1349_p3  ;;  %p1371_p8 = scmp.lt.s32.totalorder %s1369_s18, %s1362_s25 }
  0xa5   : > { %p1366_p13 = pneg %p1365_p2  ;;  %p1372_p5 = por %p1371_p8, %p1370_p0 }
  0xa7   : > { %p1373_p7 = pnand %p1372_p5, %p1366_p13 }
  0xa9   : > { %1376 = shalt.err (!%p1373_p7)
}
  0xaa   : > { %s2393_s0 = smov 8   ;;  %331 = sbr.rel (%p1746_p9) target bundleno = 418 (0x1a2), region = 36 }
  0xab   : > { %1127 = dma.hbm_to_vmem [thread:$0]  (!%p1900_p6), %s1894_s2, 512, %s1896_s5, %s1904_s7, %s2377_s13, %s2376_s8, %s2393_s0  }
  0xac   : > { %s2394_s4 = sld [smem:[#allocation20_spill]] (!%p1746_p9)  ;;  %s1938_s15 = sand.u32 (!%p1746_p9), 1, %s1515_s22  }
  0xad   : > { %s1083_s25 = sshll.u32 (!%p1746_p9), %s1938_s15, 5  ;;  %s334_s11 = scalar_lea.sflag (!%p1746_p9), [#allocation4], %s1938_s15 }
  0xae   : > { %s1942_s14 = scalar_lea.vmem (!%p1746_p9), [#allocation3], %s1083_s25 }
  0xb2   : > { %p2395_p0 = scmp.ne.s32.totalorder %s2394_s4, 0 }
  0xb4   : > { %1462 = dma.done.wait (%p2395_p0), %s334_s11, 512  }
  0xb5   : > { %1464 = vsyncadd (%p2395_p0), %s334_s11, 4294966784  ;;  %s342_s2 = sand.u32 1, %s1653_s29   ;;  %s1949_s8 = scalar_lea.vmem [#allocation6], %s1083_s25 }
  0xb6   : > { %s343_s6 = scalar_lea.sflag [#allocation7], %s342_s2 }
  0xb7   : > { %1466 = dma.done.wait (%p2395_p0), %s343_s6, 512  }
  0xb8   : > { %1468 = vsyncadd (%p2395_p0), %s343_s6, 4294966784  ;;  %s353_s13 = sand.u32 1, %s1503_s19   ;;  %p2396_p9 = scmp.ne.s32.totalorder %s2380_s9, 0 }
  0xb9   : > { %s1085_s10 = sshll.u32 %s353_s13, 5 }
  0xba   : > { %s1956_s5 = scalar_lea.vmem [#allocation8], %s1085_s10 }
  0xbb   : > { %1470 = dma.done.wait (%p2396_p9), %s343_s6, 512  }
  0xbc   : > { %1472 = vsyncadd (%p2396_p9), %s343_s6, 4294966784  ;;  %s360_s29 = sand.u32 1, %s1491_s16   ;;  %p2397_p6 = scmp.ne.s32.totalorder %s2389_s21, 0 }
  0xbd   : > { %s1086_s7 = sshll.u32 %s360_s29, 5  ;;  %s361_s18 = scalar_lea.sflag [#allocation10], %s360_s29 }
  0xbe   : > { %s1963_s0 = scalar_lea.vmem [#allocation9], %s1086_s7 }
  0xbf   : > { %1474 = dma.done.wait (%p2397_p6), %s361_s18, 512  }
  0xc0   : > { %1476 = vsyncadd (%p2397_p6), %s361_s18, 4294966784  ;;  %s2398_s4 = sld [smem:[#allocation18_spill]]  ;;  %v444_v0 = vlaneseq  ;;  %vm418_vm0 = vcmask 130048   ;;  %v1548_v4 = vmov 0.0   ;;  %v433_v7 = vld [vmem:[%s1949_s8 + $0x8] sm:$0xff]  ;;  %vm488_vm2 = vcmask 1040384  }
  0xc1   : > { %420 = vst.msk [vmem:[#allocation2 + $0x8] sm:$0xff] %vm418_vm0, %v1548_v4  ;;  %423 = vst.msk [vmem:[#allocation2 + $0x20] sm:$0xff] %vm418_vm0, %v1548_v4  ;;  %v437_v8 = vld [vmem:[%s1956_s5 + $0xf] sm:$0x1]  ;;  %v469_v10 = vrot.slane %v433_v7, 7  ;;  %v432_v11 = vld [vmem:[%s1949_s8] sm:$0xff] }
  0xc2   : > { %v445_v1 = vshrl.u32 %v444_v0, 7  ;;  %426 = vst.msk [vmem:[#allocation2 + $0x38] sm:$0xff] %vm418_vm0, %v1548_v4  ;;  %419 = vst.msk [vmem:[#allocation2] sm:$0xff] %vm418_vm0, %v1548_v4  ;;  %v436_v12 = vld [vmem:[%s1956_s5 + $0x7] sm:$0x1]  ;;  %vm575_vm4 = vcmask 1046528  }
  0xc3   : > { %421 = vst.msk [vmem:[#allocation2 + $0x10] sm:$0xff] %vm418_vm0, %v1548_v4  ;;  %422 = vst.msk [vmem:[#allocation2 + $0x18] sm:$0xff] %vm418_vm0, %v1548_v4  ;;  %vm609_vm5 = vcmask 1045504   ;;  %v1990_v13 = vld [vmem:[%s1942_s14 + $0x8] sm:$0xff]  ;;  %v468_v15 = vrot.slane %v432_v11, 7  ;;  %v434_v17 = vld [vmem:[%s1949_s8 + $0x10] sm:$0xff] }
  0xc4   : > { %424 = vst.msk [vmem:[#allocation2 + $0x28] sm:$0xff] %vm418_vm0, %v1548_v4  ;;  %425 = vst.msk [vmem:[#allocation2 + $0x30] sm:$0xff] %vm418_vm0, %v1548_v4  ;;  %v441_v16 = vld [vmem:[%s1963_s0 + $0x8] sm:$0x1]  ;;  %v440_v20 = vld [vmem:[%s1963_s0] sm:$0x1] }
  0xc5   : > { %427 = vst.msk [vmem:[#allocation2 + $0x40] sm:$0xff] %vm418_vm0, %v1548_v4  ;;  %v442_v21 = vld [vmem:[%s1963_s0 + $0x10] sm:$0x1]  ;;  %v470_v22 = vrot.slane %v434_v17, 7  ;;  %s1549_s9 = smov 113   ;;  %v2012_v27 = vld [vmem:[%s1942_s14] sm:$0xff] }
  0xc6   : > { %s1087_s25 = sshll.u32 %s2398_s4, 3  ;;  %v438_v28 = vld [vmem:[%s1956_s5 + $0x17] sm:$0x1]  ;;  %v435_v33 = vld [vmem:[%s1949_s8 + $0x18] sm:$0xff]  ;;  %s1550_s21 = smov 1   ;;  %vm553_vm6 = vcmask 7168  }
  0xc7   : > { %s1088_s11 = sadd.s32 4294967295, %s1087_s25  ;;  %s1102_s2 = sadd.s32 8, %s1087_s25  ;;  %v443_v34 = vld [vmem:[%s1963_s0 + $0x18] sm:$0x1]  ;;  %v471_v46 = vrot.slane %v435_v33, 7  ;;  %v2057_v59 = vld [vmem:[%s1942_s14 + $0x10] sm:$0xff] }
  0xc8   : > { %v448_v2 = vstv %s1088_s11  ;;  %v457_v3 = vstv %s1102_s2  ;;  %s1551_s6 = smov 127   ;;  %v672_v33 = vld [vmem:[#allocation2 + $0x20] sm:$0xff]  ;;  %s1103_s8 = smul.u32 72, %s1938_s15  ;;  %vm750_vm7 = vcmask 121856  }
  0xc9   : > { %v1980_v5 = vadd.s32 %v448_v2, %v445_v1  ;;  %v458_v6 = vadd.s32 %v457_v3, %v445_v1  ;;  %s2399_s10 = sld [smem:[#allocation19_spill]]  ;;  %s2402_s18 = sld [smem:[#allocation21_spill]] }
  0xca   : > { %s2118_s13 = scalar_lea.vmem [#allocation11], %s1103_s8 }
  0xcb   : > { %vm450_vm1 = vcmp.ge.s32.totalorder %v1980_v5, 0  ;;  %vm459_vm3 = vcmp.lt.s32.totalorder %v458_v6, 16  ;;  %v439_v6 = vld [vmem:[%s1956_s5 + $0x1f] sm:$0x1]  ;;  %s892_s0 = sshll.u32 %s2118_s13, 4  ;;  %s2244_s0 = int_to_ptr.vmem [resolvable:$true] %s892_s0 }
  0xcc   : > { %v452_v9 = vsel %vm450_vm1, %v437_v8, 0.0  ;;  %v451_v14 = vsel %vm450_vm1, %v436_v12, 0.0  ;;  %v461_v19 = vsel %vm459_vm3, %v441_v16, 0.0  ;;  %v460_v35 = vsel %vm459_vm3, %v440_v20, 0.0 }
  0xcd   : > { %v1997_v18 = vsel %vm488_vm2, %v452_v9, %v469_v10  ;;  %v2009_v26 = vsel %vm488_vm2, %v451_v14, %v468_v15  ;;  %v481_v32 = vrot.slane %v461_v19, 7  ;;  %v462_v36 = vsel %vm459_vm3, %v442_v21, 0.0  ;;  %v2083_v19 = vld [vmem:[%s1942_s14 + $0x18] sm:$0xff]  ;;  %s1552_s14 = smov 15  }
  0xce   : > { %509 = vrot.lane.b32.xlu1 %v1997_v18, %s1549_s9  ;;  %v638_v23 = vmul.f32 %v1997_v18, %v1990_v13  ;;  %v653_v24 = vrot.slane %v1997_v18, 1  ;;  %v680_v25 = vrot.slane %v1997_v18, 2  ;;  %505 = vrot.lane.b32.xlu0 %v2009_v26, %s1549_s9  ;;  %v637_v29 = vmul.f32 %v2009_v26, %v2012_v27 }
  0xcf   : > { %v648_v30 = vrot.slane %v2009_v26, 1  ;;  %v675_v31 = vrot.slane %v2009_v26, 2  ;;  %v453_v37 = vsel %vm450_vm1, %v438_v28, 0.0  ;;  %v463_v38 = vsel %vm459_vm3, %v443_v34, 0.0  ;;  %v699_v34 = vld [vmem:[#allocation2 + $0x38] sm:$0xff]  ;;  %s1104_s5 = smul.u32 18, %s2399_s10 }
  0xd0   : > { %v639_v39 = vadd.f32 %v638_v23, %v637_v29  ;;  %v2029_v40 = vsel %vm488_vm2, %v469_v10, %v481_v32  ;;  %v480_v41 = vrot.slane %v460_v35, 7  ;;  %v482_v42 = vrot.slane %v462_v36, 7  ;;  %p2404_p4 = scmp.ne.s32.totalorder %s2402_s18, 0 }
  0xd1   : > { %v654_v43 = vrot.slane %v2029_v40, 1  ;;  %v681_v44 = vrot.slane %v2029_v40, 2  ;;  %v2036_v45 = vsel %vm488_vm2, %v453_v37, %v470_v22  ;;  %v483_v63 = vrot.slane %v463_v38, 7  ;;  %s889_s29 = sadd.s32 %s2398_s4, %s1104_s5  ;;  %s2403_s4 = sld [smem:[#allocation27_spill]] }
  0xd2   : > { %511 = vrot.lane.b32.xlu1 %v2029_v40, %s1549_s9  ;;  %529 = vrot.lane.b32.xlu0 %v2009_v26, %s1550_s21  ;;  %v2041_v47 = vsel %vm488_vm2, %v468_v15, %v480_v41  ;;  %v2044_v48 = vsel %vm488_vm2, %v470_v22, %v482_v42  ;;  %v659_v49 = vrot.slane %v2036_v45, 1  ;;  %v686_v50 = vrot.slane %v2036_v45, 2  ;;  %s1098_s7 = sshll.u32 %s889_s29, 7 }
  0xd3   : > { %v655_v51 = vsel %vm575_vm4, %v653_v24, %v654_v43  ;;  %v682_v52 = vsel %vm609_vm5, %v680_v25, %v681_v44  ;;  %v649_v53 = vrot.slane %v2041_v47, 1  ;;  %v676_v54 = vrot.slane %v2041_v47, 2  ;;  %v645_v25 = vld [vmem:[#allocation2 + $0x8] sm:$0xff] }
  0xd4   : > { %v657_v55 = vmul.f32 %v655_v51, %v1990_v13  ;;  %v684_v56 = vmul.f32 %v682_v52, %v1990_v13  ;;  %v660_v57 = vrot.slane %v2044_v48, 1  ;;  %v687_v58 = vrot.slane %v2044_v48, 2 }
  0xd5   : > { %v650_v60 = vsel %vm575_vm4, %v648_v30, %v649_v53  ;;  %v677_v61 = vsel %vm609_vm5, %v675_v31, %v676_v54  ;;  %v640_v62 = vmul.f32 %v2036_v45, %v2057_v59  ;;  %v496_v11 = vsel %vm488_vm2, %v471_v46, %v483_v63 }
  0xd6   : > { %531 = vrot.lane.b32.xlu1 %v2041_v47, %s1550_s21  ;;  %v652_v1 = vmul.f32 %v650_v60, %v2012_v27  ;;  %v679_v2 = vmul.f32 %v677_v61, %v2012_v27  ;;  %533 = vrot.lane.b32.xlu0 %v1997_v18, %s1550_s21  ;;  %v661_v3 = vsel %vm575_vm4, %v659_v49, %v660_v57  ;;  %v666_v14 = vrot.slane %v496_v11, 1 }
  0xd7   : > { %v688_v4 = vsel %vm609_vm5, %v686_v50, %v687_v58  ;;  %v663_v7 = vmul.f32 %v661_v3, %v2057_v59  ;;  %v641_v12 = vadd.f32 %v640_v62, %v639_v39  ;;  %v693_v15 = vrot.slane %v496_v11, 2  ;;  %s2240_s2 = scalar_lea.hbm %s2403_s4, %s1098_s7 }
  0xd8   : > { %v658_v8 = vadd.f32 %v657_v55, %v652_v1  ;;  %v685_v9 = vadd.f32 %v684_v56, %v679_v2  ;;  %v690_v10 = vmul.f32 %v688_v4, %v2057_v59  ;;  %v454_v16 = vsel %vm450_vm1, %v439_v6, 0.0 }
  0xd9   : > { %v492_v17 = vsel %vm488_vm2, %v454_v16, %v471_v46 }
  0xda   : > { %535 = vrot.lane.b32.xlu1 %v2029_v40, %s1550_s21  ;;  %507 = vrot.lane.b32.xlu0 %v2041_v47, %s1549_s9  ;;  %v665_v20 = vrot.slane %v492_v17, 1  ;;  %v692_v21 = vrot.slane %v492_v17, 2  ;;  %v642_v22 = vmul.f32 %v492_v17, %v2083_v19  ;;  %v664_v23 = vadd.f32 %v663_v7, %v658_v8 }
  0xdb   : > { %v691_v24 = vadd.f32 %v690_v10, %v685_v9 }
  0xdc   : > { %v667_v5 = vsel %vm575_vm4, %v665_v20, %v666_v14  ;;  %v694_v28 = vsel %vm609_vm5, %v692_v21, %v693_v15  ;;  %v643_v29 = vadd.f32 %v642_v22, %v641_v12  ;;  %v2139_v14 = vand.u32 127, %v444_v0 }
  0xdd   : > { %v669_v30 = vmul.f32 %v667_v5, %v2083_v19  ;;  %v696_v31 = vmul.f32 %v694_v28, %v2083_v19 }
  0xde   : > { %704 = vrot.lane.b32.xlu1 %v2041_v47, %s1551_s6  ;;  %702 = vrot.lane.b32.xlu0 %v2009_v26, %s1551_s6  ;;  %v646_v32 = vadd.f32 %v645_v25, %v643_v29 }
  0xdf   : > { %v670_v35 = vadd.f32 %v669_v30, %v664_v23  ;;  %v697_v36 = vadd.f32 %v696_v31, %v691_v24 }
  0xe0   : > { %647 = vst.msk [vmem:[#allocation2 + $0x8] sm:$0xff] %vm418_vm0, %v646_v32 }
  0xe1   : > { %v673_v37 = vadd.f32 %v672_v33, %v670_v35  ;;  %v700_v38 = vadd.f32 %v699_v34, %v697_v36 }
  0xe2   : > { %708 = vrot.lane.b32.xlu1 %v2029_v40, %s1551_s6  ;;  %706 = vrot.lane.b32.xlu0 %v1997_v18, %s1551_s6 }
  0xe3   : > { %674 = vst.msk [vmem:[#allocation2 + $0x20] sm:$0xff] %vm418_vm0, %v673_v37  ;;  %701 = vst.msk [vmem:[#allocation2 + $0x38] sm:$0xff] %vm418_vm0, %v700_v38 }
  0xe6   : > { %728 = vrot.lane.b32.xlu1 %v2041_v47, %s1552_s14  ;;  %726 = vrot.lane.b32.xlu0 %v2009_v26, %s1552_s14 }
  0xe7   : > { %v844_v26 = vld [vmem:[#allocation2 + $0x8] sm:$0xff] }
  0xe8   : > { %1090 = vst.msk [vmem:[%s2118_s13 + $0x8] sm:$0xff] %vm418_vm0, %v844_v26 }
  0xea   : > { %732 = vrot.lane.b32.xlu1 %v2029_v40, %s1552_s14  ;;  %730 = vrot.lane.b32.xlu0 %v1997_v18, %s1552_s14  ;;  %v859_v18 = vld [vmem:[#allocation2 + $0x20] sm:$0xff]  ;;  %v870_v39 = vld [vmem:[#allocation2 + $0x38] sm:$0xff] }
  0xeb   : > { %1093 = vst.msk [vmem:[%s2118_s13 + $0x20] sm:$0xff] %vm418_vm0, %v859_v18  ;;  %1096 = vst.msk [vmem:[%s2118_s13 + $0x38] sm:$0xff] %vm418_vm0, %v870_v39 }
  0xee   : > { %515 = vrot.lane.b32.xlu1 %v2044_v48, %s1549_s9  ;;  %513 = vrot.lane.b32.xlu0 %v2036_v45, %s1549_s9 }
  0xf2   : > { %539 = vrot.lane.b32.xlu1 %v2044_v48, %s1550_s21  ;;  %537 = vrot.lane.b32.xlu0 %v2036_v45, %s1550_s21 }
  0xf6   : > { %712 = vrot.lane.b32.xlu1 %v2044_v48, %s1551_s6  ;;  %710 = vrot.lane.b32.xlu0 %v2036_v45, %s1551_s6 }
  0xfa   : > { %736 = vrot.lane.b32.xlu1 %v2044_v48, %s1552_s14  ;;  %734 = vrot.lane.b32.xlu0 %v2036_v45, %s1552_s14 }
  0xfe   : > { %519 = vrot.lane.b32.xlu1 %v496_v11, %s1549_s9  ;;  %517 = vrot.lane.b32.xlu0 %v492_v17, %s1549_s9  ;;  %s878_s9 = scalar_lea.sflag [#allocation5], %s1938_s15 }
 0x102   : > { %543 = vrot.lane.b32.xlu1 %v496_v11, %s1550_s21  ;;  %541 = vrot.lane.b32.xlu0 %v492_v17, %s1550_s21  ;;  %s1377_s21 = scalar_lea.vmem %s2244_s0, 1152 }
 0x103   : > { %p1378_p3 = scmp.ne.s32.totalorder %s2244_s0, %s1377_s21 }
 0x105   : > { %p1379_p1 = pnand %p1378_p3, %p2404_p4 }
 0x106   : > { %716 = vrot.lane.b32.xlu1 %v496_v11, %s1551_s6  ;;  %714 = vrot.lane.b32.xlu0 %v492_v17, %s1551_s6  ;;  %s1553_s6 = smov [#allocation11]  }
 0x107   : > { %p1380_p11 = pneg %p1379_p1 }
 0x10a   : > { %740 = vrot.lane.b32.xlu1 %v496_v11, %s1552_s14  ;;  %738 = vrot.lane.b32.xlu0 %v492_v17, %s1552_s14  ;;  %s1381_s14 = sshll.u32 %s1553_s6, 4  ;;  %s1382_s14 = int_to_ptr.vmem [resolvable:$false] %s1381_s14 }
 0x10b   : > { %s1383_s8 = scalar_lea.vmem %s1382_s14, 2304  ;;  %p1384_p12 = scmp.lt.s32.totalorder %s2244_s0, %s1382_s14 }
 0x10c   : > { %p1385_p10 = scmp.lt.s32.totalorder %s1383_s8, %s1377_s21 }
 0x10e   : > { %p1386_p2 = por %p1385_p10, %p1384_p12 }
 0x110   : > { %p1387_p13 = pnand %p1386_p2, %p1380_p11 }
 0x140   : > { %v510_v40 = vpop.permute.xlu1 %509  ;;  %v506_v41 = vpop.permute.xlu0 %505 }
 0x144   : > { %v512_v42 = vpop.permute.xlu1 %511  ;;  %v530_v43 = vpop.permute.xlu0 %529 }
 0x145   : > { %v554_v62 = vsel %vm553_vm6, %v506_v41, %v530_v43 }
 0x146   : > { %v576_v7 = vrot.slane %v554_v62, 1  ;;  %v610_v10 = vrot.slane %v554_v62, 2  ;;  %v562_v23 = vmul.f32 %v554_v62, %v2012_v27 }
 0x148   : > { %v532_v44 = vpop.permute.xlu1 %531  ;;  %v534_v45 = vpop.permute.xlu0 %533 }
 0x149   : > { %v556_v63 = vsel %vm553_vm6, %v510_v40, %v534_v45 }
 0x14a   : > { %v583_v8 = vrot.slane %v556_v63, 1  ;;  %v615_v11 = vrot.slane %v556_v63, 2  ;;  %v563_v24 = vmul.f32 %v556_v63, %v1990_v13 }
 0x14c   : > { %v536_v46 = vpop.permute.xlu1 %535  ;;  %v508_v47 = vpop.permute.xlu0 %507  ;;  %v564_v43 = vadd.f32 %v563_v24, %v562_v23 }
 0x14d   : > { %v557_v58 = vsel %vm553_vm6, %v512_v42, %v536_v46  ;;  %v555_v60 = vsel %vm553_vm6, %v508_v47, %v532_v44  ;;  %v2164_v42 = vadd.s32 4294967295, %v2139_v14 }
 0x14e   : > { %v584_v2 = vrot.slane %v557_v58, 1  ;;  %v577_v3 = vrot.slane %v555_v60, 1  ;;  %v616_v4 = vrot.slane %v557_v58, 2  ;;  %v611_v6 = vrot.slane %v555_v60, 2 }
 0x14f   : > { %vm838_vm8 = vcmp.ge.s32.totalorder %v2164_v42, 0  ;;  %vm839_vm9 = vcmp.lt.s32.totalorder %v2164_v42, 16  ;;  %v802_v42 = vld [vmem:[#allocation2 + $0x28] sm:$0xff] }
 0x150   : > { %v705_v48 = vpop.permute.xlu1 %704  ;;  %v703_v49 = vpop.permute.xlu0 %702  ;;  %v585_v15 = vsel %vm575_vm4, %v583_v8, %v584_v2  ;;  %v578_v16 = vsel %vm575_vm4, %v576_v7, %v577_v3  ;;  %v617_v17 = vsel %vm609_vm5, %v615_v11, %v616_v4  ;;  %v612_v20 = vsel %vm609_vm5, %v610_v10, %v611_v6  ;;  %vm2210_vm10 = vmand %vm838_vm8, %vm839_vm9 }
 0x151   : > { %v587_v28 = vmul.f32 %v585_v15, %v1990_v13  ;;  %v580_v29 = vmul.f32 %v578_v16, %v2012_v27  ;;  %v619_v33 = vmul.f32 %v617_v17, %v1990_v13  ;;  %v614_v34 = vmul.f32 %v612_v20, %v2012_v27  ;;  %v569_v17 = vld [vmem:[#allocation2] sm:$0xff] }
 0x153   : > { %v588_v44 = vadd.f32 %v587_v28, %v580_v29  ;;  %v620_v46 = vadd.f32 %v619_v33, %v614_v34  ;;  %v606_v34 = vld [vmem:[#allocation2 + $0x18] sm:$0xff] }
 0x154   : > { %v709_v50 = vpop.permute.xlu1 %708  ;;  %v707_v51 = vpop.permute.xlu0 %706 }
 0x158   : > { %v729_v52 = vpop.permute.xlu1 %728  ;;  %v727_v53 = vpop.permute.xlu0 %726 }
 0x159   : > { %v2150_v25 = vsel %vm750_vm7, %v705_v48, %v729_v52  ;;  %v2153_v0 = vsel %vm750_vm7, %v703_v49, %v727_v53 }
 0x15a   : > { %v773_v37 = vrot.slane %v2150_v25, 1  ;;  %v772_v38 = vrot.slane %v2153_v0, 1  ;;  %v806_v47 = vrot.slane %v2150_v25, 2  ;;  %v759_v48 = vmul.f32 %v2153_v0, %v2012_v27 }
 0x15c   : > { %v733_v54 = vpop.permute.xlu1 %732  ;;  %v731_v55 = vpop.permute.xlu0 %730 }
 0x15d   : > { %v754_v30 = vsel %vm750_vm7, %v709_v50, %v733_v54  ;;  %v753_v31 = vsel %vm750_vm7, %v707_v51, %v731_v55  ;;  %v774_v50 = vsel %vm575_vm4, %v772_v38, %v773_v37  ;;  %v805_v51 = vrot.slane %v2153_v0, 2 }
 0x15e   : > { %v780_v39 = vrot.slane %v754_v30, 1  ;;  %v779_v40 = vrot.slane %v753_v31, 1  ;;  %v811_v54 = vrot.slane %v754_v30, 2  ;;  %v760_v55 = vmul.f32 %v753_v31, %v1990_v13 }
 0x15f   : > { %v776_v30 = vmul.f32 %v774_v50, %v2012_v27 }
 0x160   : > { %v516_v56 = vpop.permute.xlu1 %515  ;;  %v514_v57 = vpop.permute.xlu0 %513 }
 0x164   : > { %v540_v61 = vpop.permute.xlu1 %539  ;;  %v538_v1 = vpop.permute.xlu0 %537 }
 0x165   : > { %v559_v21 = vsel %vm553_vm6, %v516_v56, %v540_v61  ;;  %v558_v22 = vsel %vm553_vm6, %v514_v57, %v538_v1  ;;  %v781_v56 = vsel %vm575_vm4, %v779_v40, %v780_v39  ;;  %v810_v57 = vrot.slane %v753_v31, 2 }
 0x166   : > { %v592_v35 = vrot.slane %v559_v21, 1  ;;  %v591_v36 = vrot.slane %v558_v22, 1  ;;  %v622_v26 = vrot.slane %v559_v21, 2  ;;  %v621_v18 = vrot.slane %v558_v22, 2 }
 0x167   : > { %v565_v52 = vmul.f32 %v558_v22, %v2057_v59  ;;  %v812_v21 = vsel %vm609_vm5, %v810_v57, %v811_v54  ;;  %v807_v31 = vsel %vm609_vm5, %v805_v51, %v806_v47  ;;  %v761_v39 = vadd.f32 %v760_v55, %v759_v48 }
 0x168   : > { %v713_v9 = vpop.permute.xlu1 %712  ;;  %v711_v12 = vpop.permute.xlu0 %710  ;;  %v593_v49 = vsel %vm575_vm4, %v591_v36, %v592_v35  ;;  %v623_v53 = vsel %vm609_vm5, %v621_v18, %v622_v26  ;;  %v634_v35 = vld [vmem:[#allocation2 + $0x30] sm:$0xff]  ;;  %v783_v40 = vmul.f32 %v781_v56, %v1990_v13  ;;  %v809_v50 = vmul.f32 %v807_v31, %v2012_v27 }
 0x169   : > { %v595_v60 = vmul.f32 %v593_v49, %v2057_v59  ;;  %v625_v2 = vmul.f32 %v623_v53, %v2057_v59  ;;  %v566_v7 = vadd.f32 %v565_v52, %v564_v43 }
 0x16a   : > { %v784_v56 = vadd.f32 %v783_v40, %v776_v30 }
 0x16b   : > { %v596_v0 = vadd.f32 %v595_v60, %v588_v44 }
 0x16c   : > { %v737_v5 = vpop.permute.xlu1 %736  ;;  %v735_v32 = vpop.permute.xlu0 %734 }
 0x16d   : > { %v756_v61 = vsel %vm750_vm7, %v713_v9, %v737_v5  ;;  %v755_v62 = vsel %vm750_vm7, %v711_v12, %v735_v32  ;;  %v626_v5 = vadd.f32 %v625_v2, %v620_v46 }
 0x16e   : > { %v788_v11 = vrot.slane %v756_v61, 1  ;;  %v817_v12 = vrot.slane %v756_v61, 2  ;;  %v787_v15 = vrot.slane %v755_v62, 1  ;;  %v816_v16 = vrot.slane %v755_v62, 2 }
 0x16f   : > { %v762_v32 = vmul.f32 %v755_v62, %v2057_v59 }
 0x170   : > { %v520_v41 = vpop.permute.xlu1 %519  ;;  %v518_v45 = vpop.permute.xlu0 %517  ;;  %v789_v36 = vsel %vm575_vm4, %v787_v15, %v788_v11  ;;  %v818_v37 = vsel %vm609_vm5, %v816_v16, %v817_v12 }
 0x171   : > { %v791_v51 = vmul.f32 %v789_v36, %v2057_v59  ;;  %v820_v52 = vmul.f32 %v818_v37, %v2057_v59  ;;  %v763_v53 = vadd.f32 %v762_v32, %v761_v39 }
 0x173   : > { %v792_v62 = vadd.f32 %v791_v51, %v784_v56 }
 0x174   : > { %v544_v58 = vpop.permute.xlu1 %543  ;;  %v542_v1 = vpop.permute.xlu0 %541 }
 0x175   : > { %v561_v63 = vsel %vm553_vm6, %v520_v41, %v544_v58  ;;  %v560_v6 = vsel %vm553_vm6, %v518_v45, %v542_v1  ;;  %v814_v41 = vmul.f32 %v812_v21, %v1990_v13  ;;  %v767_v58 = vld [vmem:[#allocation2 + $0x10] sm:$0xff] }
 0x176   : > { %v600_v3 = vrot.slane %v561_v63, 1  ;;  %v628_v4 = vrot.slane %v561_v63, 2  ;;  %v567_v8 = vmul.f32 %v560_v6, %v2083_v19  ;;  %v599_v10 = vrot.slane %v560_v6, 1 }
 0x177   : > { %v627_v9 = vrot.slane %v560_v6, 2  ;;  %v815_v57 = vadd.f32 %v814_v41, %v809_v50  ;;  %v829_v6 = vld [vmem:[#allocation2 + $0x40] sm:$0xff] }
 0x178   : > { %v717_v20 = vpop.permute.xlu1 %716  ;;  %v568_v22 = vadd.f32 %v567_v8, %v566_v7  ;;  %v601_v23 = vsel %vm575_vm4, %v599_v10, %v600_v3  ;;  %v715_v25 = vpop.permute.xlu0 %714 }
 0x179   : > { %v629_v24 = vsel %vm609_vm5, %v627_v9, %v628_v4  ;;  %v603_v28 = vmul.f32 %v601_v23, %v2083_v19  ;;  %v821_v63 = vadd.f32 %v820_v52, %v815_v57 }
 0x17a   : > { %v631_v29 = vmul.f32 %v629_v24, %v2083_v19  ;;  %v570_v33 = vadd.f32 %v569_v17, %v568_v22 }
 0x17b   : > { %v604_v38 = vadd.f32 %v603_v28, %v596_v0 }
 0x17c   : > { %v632_v26 = vadd.f32 %v631_v29, %v626_v5  ;;  %v741_v18 = vpop.permute.xlu1 %740  ;;  %572 = vst.msk [vmem:[#allocation2] sm:$0xff] %vm418_vm0, %v570_v33  ;;  %v739_v44 = vpop.permute.xlu0 %738 }
 0x17d   : > { %v758_v43 = vsel %vm750_vm7, %v717_v20, %v741_v18  ;;  %v607_v45 = vadd.f32 %v606_v34, %v604_v38  ;;  %v757_v48 = vsel %vm750_vm7, %v715_v25, %v739_v44 }
 0x17e   : > { %v635_v46 = vadd.f32 %v634_v35, %v632_v26  ;;  %v796_v47 = vrot.slane %v758_v43, 1  ;;  %v823_v49 = vrot.slane %v758_v43, 2  ;;  %v764_v13 = vmul.f32 %v757_v48, %v2083_v19 }
 0x17f   : > { %608 = vst.msk [vmem:[#allocation2 + $0x18] sm:$0xff] %vm418_vm0, %v607_v45  ;;  %v795_v54 = vrot.slane %v757_v48, 1  ;;  %v822_v55 = vrot.slane %v757_v48, 2 }
 0x180   : > { %636 = vst.msk [vmem:[#allocation2 + $0x30] sm:$0xff] %vm418_vm0, %v635_v46  ;;  %v765_v59 = vadd.f32 %v764_v13, %v763_v53 }
 0x181   : > { %v797_v60 = vsel %vm575_vm4, %v795_v54, %v796_v47  ;;  %v824_v61 = vsel %vm609_vm5, %v822_v55, %v823_v49 }
 0x182   : > { %v799_v1 = vmul.f32 %v797_v60, %v2083_v19  ;;  %v826_v2 = vmul.f32 %v824_v61, %v2083_v19  ;;  %v768_v4 = vadd.f32 %v767_v58, %v765_v59  ;;  %v847_v19 = vadd.s32 1, %v2139_v14 }
 0x183   : > { %v841_v3 = vld [vmem:[#allocation2] sm:$0xff] }
 0x184   : > { %v842_v7 = vsel %vm2210_vm10, %v841_v3, 0.0  ;;  %v800_v8 = vadd.f32 %v799_v1, %v792_v62  ;;  %v827_v10 = vadd.f32 %v826_v2, %v821_v63  ;;  %769 = vst.msk [vmem:[#allocation2 + $0x10] sm:$0xff] %vm418_vm0, %v768_v4  ;;  %vm849_vm11 = vcmp.lt.s32.totalorder %v847_v19, 16 }
 0x185   : > { %843 = vst.msk [vmem:[%s2118_s13] sm:$0xff] %vm418_vm0, %v842_v7 }
 0x186   : > { %v855_v9 = vld [vmem:[#allocation2 + $0x18] sm:$0xff]  ;;  %v803_v12 = vadd.f32 %v802_v42, %v800_v8  ;;  %v830_v15 = vadd.f32 %v829_v6, %v827_v10 }
 0x187   : > { %v866_v11 = vld [vmem:[#allocation2 + $0x30] sm:$0xff]  ;;  %v856_v16 = vsel %vm2210_vm10, %v855_v9, 0.0 }
 0x188   : > { %v867_v17 = vsel %vm2210_vm10, %v866_v11, 0.0  ;;  %1092 = vst.msk [vmem:[%s2118_s13 + $0x18] sm:$0xff] %vm418_vm0, %v856_v16  ;;  %804 = vst.msk [vmem:[#allocation2 + $0x28] sm:$0xff] %vm418_vm0, %v803_v12 }
 0x189   : > { %1095 = vst.msk [vmem:[%s2118_s13 + $0x30] sm:$0xff] %vm418_vm0, %v867_v17  ;;  %831 = vst.msk [vmem:[#allocation2 + $0x40] sm:$0xff] %vm418_vm0, %v830_v15 }
 0x18b   : > { %v851_v14 = vld [vmem:[#allocation2 + $0x10] sm:$0xff] }
 0x18c   : > { %v852_v20 = vsel %vm849_vm11, %v851_v14, 0.0 }
 0x18d   : > { %1091 = vst.msk [vmem:[%s2118_s13 + $0x10] sm:$0xff] %vm418_vm0, %v852_v20 }
 0x18f   : > { %v862_v21 = vld [vmem:[#allocation2 + $0x28] sm:$0xff] }
 0x190   : > { %v873_v22 = vld [vmem:[#allocation2 + $0x40] sm:$0xff]  ;;  %v863_v23 = vsel %vm849_vm11, %v862_v21, 0.0 }
 0x191   : > { %v874_v24 = vsel %vm849_vm11, %v873_v22, 0.0  ;;  %1094 = vst.msk [vmem:[%s2118_s13 + $0x28] sm:$0xff] %vm418_vm0, %v863_v23 }
 0x192   : > { %1097 = vst.msk [vmem:[%s2118_s13 + $0x40] sm:$0xff] %vm418_vm0, %v874_v24 }
 0x193   : > { %1390 = shalt.err (!%p1387_p13)
}
 0x194   : > { %s1391_s13 = scalar_lea.hbm %s2240_s2, 1152  ;;  %s1395_s29 = scalar_lea.hbm %s2403_s4, 4608 }
 0x195   : > { %p1392_p8 = scmp.ne.s32.totalorder %s2240_s2, %s1391_s13  ;;  %p1396_p0 = scmp.lt.u32.totalorder %s2240_s2, %s2403_s4 }
 0x196   : > { %p1397_p9 = scmp.lt.u32.totalorder %s1395_s29, %s1391_s13  ;;  %p1399_p3 = scmp.lt.u32.totalorder %s1391_s13, %s2240_s2 }
 0x197   : > { %p1393_p5 = pnand %p1392_p8, %p2404_p4 }
 0x198   : > { %p1398_p6 = por %p1397_p9, %p1396_p0 }
 0x199   : > { %p1394_p7 = pneg %p1393_p5 }
 0x19a   : > { %p1400_p1 = por %p1399_p3, %p1398_p6 }
 0x19c   : > { %p1401_p11 = pnand %p1400_p1, %p1394_p7 }
 0x19e   : > { %1404 = shalt.err (!%p1401_p11)
}
 0x19f   : > { %s1554_s11 = smov 128   ;;  %s1555_s21 = smov 256  }
 0x1a0   : > { %s1556_s6 = smov 8  }
 0x1a1   : > { %1113 = dma.vmem_to_hbm [thread:$0]  (%p2404_p4), %s2244_s0, 1152, %s2240_s2, %s878_s9, %s1554_s11, %s1555_s21, %s1556_s6  }
 0x1a2 PF: > { %s2405_s14 = sld [smem:[#allocation17_spill]]  ;;  %s2406_s8 = sld [smem:[#allocation22_spill]] }
 0x1a3   : > { %p1133_p12 = scmp.ge.s32.totalorder %s1539_s28, 2 }
 0x1a8   : > { %s907_s10 = sand.u32 1, %s2405_s14   ;;  %p2407_p10 = scmp.ne.s32.totalorder %s2406_s8, 0 }
 0x1a9   : > { %s908_s13 = scalar_lea.sflag [#allocation5], %s907_s10 }
 0x1aa   : > { %p1129_p2 = pnand %p1133_p12, %p2407_p10 }
 0x1ac   : > { %1478 = dma.done.wait (!%p1129_p2), %s908_s13, 1152  }
 0x1ad   : > { %1480 = vsyncadd (!%p1129_p2), %s908_s13, 4294966144  ;;  %s26_s28 = sadd.s32 1, %s1539_s28   ;;  %s2409_s0 = smov %s2425_s24 }
 0x1ae   : > { %p2279_p13 = scmp.ge.s32.totalorder %s26_s28, 6   ;;  %s2410_s2 = sld [smem:[#allocation23_spill]] }
 0x1af   : > { %s2411_s15 = smov %s1491_s16  ;;  %s2412_s16 = smov %s1495_s17 }
 0x1b0   : > { %s2413_s17 = smov %s1887_s12  ;;  %s2414_s18 = smov %s1503_s19 }
 0x1b1   : > { %s2415_s19 = smov %s1507_s20  ;;  %s2416_s20 = smov %s1873_s30 }
 0x1b2   : > { %s2417_s21 = smov %s1515_s22  ;;  %s2418_s22 = smov %s1519_s23 }
 0x1b3   : > { %s2419_s23 = smov %s1868_s1  ;;  %s2420_s24 = smov %s1531_s26 }
 0x1b4   : > { %s2421_s25 = smov %s1535_s27  ;;  %s2422_s26 = smov %s2409_s0 }
 0x1b5   : > { %s2423_s27 = smov %s2410_s2  ;;  %25 = sbr.rel (!%p2279_p13) target bundleno = 19 (0x13), region = 142 }
 0x1bc   :  { %913 = vsyncpa [#allocation4], 1 }
 0x1bd   :  { %915 = vsyncpa [#allocation4 + $0x1], 1 }
 0x1be   :  { %916 = vsyncpa [#allocation7], 1 }
 0x1bf   :  { %918 = vsyncpa [#allocation7 + $0x1], 1 }
 0x1c0   :  { %919 = vsyncpa [#allocation10], 1 }
 0x1c1   :  { %921 = vsyncpa [#allocation10 + $0x1], 1 }
 0x1c2   :  { %922 = vsyncpa [#allocation5], 1 }
 0x1c3   :  { %924 = vsyncpa [#allocation5 + $0x1], 1 }

</bundles_post_ra>
